<compile_context>
chip_gen: v5e
topology: v5e:2x2
jax: 0.10.0
libtpu: 0.0.40
codegen_flags: <defaults>
</compile_context>

<pallas_src>
import functools

import numpy as np
import jax
import jax.numpy as jnp
from jax import lax
from jax.experimental import pallas as pl
from jax.experimental.pallas import tpu as pltpu

VMEM_SPEC = pl.BlockSpec(memory_space=pltpu.MemorySpace.VMEM)
NEG_BIG = -1e30


# ---------------------------------------------------------------------------
# Fused whole-network kernel
# ---------------------------------------------------------------------------
def _net_kernel(x_ref, hef_ref, inc_ref, ew_ref,
                l1w_ref, l1b_ref, l2w_ref, l2b_ref, l3w_ref, l3b_ref,
                c1w_ref, c1ax_ref, c1ae_ref, c1b_ref,
                c2w_ref, c2ax_ref, c2ae_ref, c2b_ref,
                c3w_ref, c3ax_ref, c3ae_ref, c3b_ref,
                o_ref, x1_scr, x2_scr, *, heads, hid, out_ch):
    # --- hypergraph structure: read once, shared by all 3 conv layers -------
    inc = inc_ref[...].astype(jnp.float32)     # [M, N] edge-major 0/1 (bf16 in HBM)
    mask = inc > 0.0                           # [M, N]
    ew = ew_ref[...]                           # [M, 1] hyperedge weights

    # B^{-1}: per-hyperedge cardinality (lane-axis reduce), inf -> 0.
    b_deg = jnp.sum(inc, axis=1, keepdims=True)                         # [M, 1]
    b_inv = jnp.where(b_deg != 0.0,
                      pl.reciprocal(jnp.where(b_deg != 0.0, b_deg, 1.0),
                                    approx=True), 0.0)
    # D^{-1}: per-node sum of incident hyperedge weights (MXU), inf -> 0.
    d_deg = lax.dot_general(inc, ew, (((0,), (0,)), ((), ())),
                            preferred_element_type=jnp.float32)         # [N, 1]
    d_inv = jnp.where(d_deg != 0.0,
                      pl.reciprocal(jnp.where(d_deg != 0.0, d_deg, 1.0),
                                    approx=True), 0.0)

    def hconv(x_val, e_val, dst_ref, w_ref, ax_ref, ae_ref, bias_ref, n_heads, f):
        w = w_ref[...]                                                  # [Cin, H*F]
        xw = jnp.dot(x_val, w, preferred_element_type=jnp.float32)      # [N, H*F]
        et = jnp.dot(e_val, w, preferred_element_type=jnp.float32)      # [M, H*F]
        # Head-batched attention logits on the MXU:
        #   ax_ref/ae_ref are block-diagonal-by-rows [H, H*F] attention matrices,
        #   so A . XW^T gives <xh[n], a_x[h]> for all heads at once.
        ax_t = lax.dot_general(ax_ref[...], xw, (((1,), (1,)), ((), ())),
                               preferred_element_type=jnp.float32)      # [H, N]
        ae = lax.dot_general(et, ae_ref[...], (((1,), (1,)), ((), ())),
                             preferred_element_type=jnp.float32)        # [M, H]
        for h in range(n_heads):                       # small, static -> unrolled
            s = ae[:, h:h + 1] + ax_t[h:h + 1, :]                        # [M, N]
            s = jnp.maximum(s, 0.0)                    # leaky_relu, slope == 0.0
            s = jnp.where(mask, s, NEG_BIG)
            # softmax over nodes per hyperedge (lane axis of the [M, N] layout)
            s_max = jnp.max(s, axis=1, keepdims=True)                    # [M, 1]
            p = jnp.exp(s - s_max) * inc
            denom = jnp.sum(p, axis=1, keepdims=True) + 1e-16            # [M, 1]
            alpha = p * pl.reciprocal(denom, approx=True)                # [M, N]

            xh = xw[:, h * f:(h + 1) * f]                                # [N, F]
            # node -> hyperedge: plain matmul (no transposed alpha needed)
            out_e = jnp.dot(alpha, xh,
                            preferred_element_type=jnp.float32) * b_inv  # [M, F]
            # hyperedge -> node: contract over the edge axis (dim 0 of both)
            out_n = lax.dot_general(alpha, out_e, (((0,), (0,)), ((), ())),
                                    preferred_element_type=jnp.float32) * d_inv
            dst_ref[:, h * f:(h + 1) * f] = out_n       # direct slice write, no concat
        dst_ref[...] = dst_ref[...] + bias_ref[...]     # bias once per layer

    # --- network -------------------------------------------------------------
    x0 = x_ref[...]                                                      # [N, Cin]
    hef = hef_ref[...]                                                   # [M, he_dim]

    hf1 = jnp.dot(hef, l1w_ref[...], preferred_element_type=jnp.float32) + l1b_ref[...]
    hconv(x0, hf1, x1_scr, c1w_ref, c1ax_ref, c1ae_ref, c1b_ref, heads[0], hid)

    hf2 = jnp.dot(hf1, l2w_ref[...], preferred_element_type=jnp.float32) + l2b_ref[...]
    hconv(x1_scr[...], hf2, x2_scr, c2w_ref, c2ax_ref, c2ae_ref, c2b_ref, heads[1], hid)

    hf3 = jnp.dot(hf2, l3w_ref[...], preferred_element_type=jnp.float32) + l3b_ref[...]
    hconv(x2_scr[...], hf3, o_ref, c3w_ref, c3ax_ref, c3ae_ref, c3b_ref, heads[2], out_ch)


def hypergraph_net_forward(params, x, hyperedge_index, hyperedge_weight,
                           hyperedge_features, *, num_nodes, num_edges, heads,
                           hidden, out_channels):
    # Glue: dense EDGE-major incidence from the sparse (2, K) index.
    # bf16 is lossless for 0/1 and halves the HBM->VMEM DMA of the biggest tensor.
    inc = jnp.zeros((num_edges, num_nodes), jnp.bfloat16)
    inc = inc.at[hyperedge_index[1], hyperedge_index[0]].set(1.0)
    ew = hyperedge_weight.reshape(num_edges, 1).astype(jnp.float32)

    kernel = functools.partial(_net_kernel, heads=heads, hid=hidden,
                               out_ch=out_channels)
    return pl.pallas_call(
        kernel,
        out_shape=jax.ShapeDtypeStruct((num_nodes, heads[2] * out_channels),
                                       jnp.float32),
        in_specs=[VMEM_SPEC] * 22,
        out_specs=VMEM_SPEC,
        scratch_shapes=[pltpu.VMEM((num_nodes, heads[0] * hidden), jnp.float32),
                        pltpu.VMEM((num_nodes, heads[1] * hidden), jnp.float32)],
        compiler_params=pltpu.CompilerParams(vmem_limit_bytes=32 * 1024 * 1024),
    )(x, hyperedge_features, inc, ew,
      params["lin1"]["w"], params["lin1"]["b"],
      params["lin2"]["w"], params["lin2"]["b"],
      params["lin3"]["w"], params["lin3"]["b"],
      params["conv1"]["w"], params["conv1"]["att_x_t"], params["conv1"]["att_e_t"], params["conv1"]["bias"],
      params["conv2"]["w"], params["conv2"]["att_x_t"], params["conv2"]["att_e_t"], params["conv2"]["bias"],
      params["conv3"]["w"], params["conv3"]["att_x_t"], params["conv3"]["att_e_t"], params["conv3"]["bias"])


# ---------------------------------------------------------------------------
# Pure-JAX reference (for correctness check of the fused kernel)
# ---------------------------------------------------------------------------
def _reference_forward(params, x, hyperedge_index, hyperedge_weight,
                       hyperedge_features, *, num_nodes, num_edges, heads,
                       hidden, out_channels):
    inc = jnp.zeros((num_nodes, num_edges), jnp.float32)
    inc = inc.at[hyperedge_index[0], hyperedge_index[1]].set(1.0)
    ew = hyperedge_weight.reshape(1, num_edges).astype(jnp.float32)

    d = jnp.sum(inc * ew, axis=1, keepdims=True)
    d_inv = jnp.where(d != 0, 1.0 / d, 0.0)
    b = jnp.sum(inc, axis=0, keepdims=True)
    b_inv = jnp.transpose(jnp.where(b != 0, 1.0 / b, 0.0))

    def conv(xv, ev, p, h_cnt, f):
        xw = xv @ p["w"]
        et = ev @ p["w"]
        outs = []
        for h in range(h_cnt):
            xh = xw[:, h * f:(h + 1) * f]
            eh = et[:, h * f:(h + 1) * f]
            ax = jnp.sum(xh * p["att_x"][h:h + 1], axis=-1, keepdims=True)
            ae = jnp.sum(eh * p["att_e"][h:h + 1], axis=-1, keepdims=True)
            s = jnp.maximum(ax + ae.T, 0.0)
            s = jnp.where(inc > 0, s, NEG_BIG)
            pm = jnp.exp(s - jnp.max(s, axis=0, keepdims=True)) * inc
            alpha = pm / (jnp.sum(pm, axis=0, keepdims=True) + 1e-16)
            out_e = (alpha.T @ xh) * b_inv
            outs.append((alpha @ out_e) * d_inv)
        return jnp.concatenate(outs, axis=-1) + p["bias"]

    hf = hyperedge_features @ params["lin1"]["w"] + params["lin1"]["b"]
    xo = conv(x, hf, params["conv1"], heads[0], hidden)
    hf = hf @ params["lin2"]["w"] + params["lin2"]["b"]
    xo = conv(xo, hf, params["conv2"], heads[1], hidden)
    hf = hf @ params["lin3"]["w"] + params["lin3"]["b"]
    xo = conv(xo, hf, params["conv3"], heads[2], out_channels)
    return xo


# ---------------------------------------------------------------------------
# Parameter init
# ---------------------------------------------------------------------------
def _att_rows(att):
    """[H, F] attention vectors -> block-diagonal-by-rows [H, H*F] matrix."""
    h, f = att.shape
    m = jnp.zeros((h, h * f), jnp.float32)
    for i in range(h):
        m = m.at[i, i * f:(i + 1) * f].set(att[i])
    return m


def init_params(key, in_ch, hid, out_ch, he_dim, heads):
    keys = jax.random.split(key, 6)

    def lin_p(k, fi, fo):
        kw_, kb_ = jax.random.split(k)
        return {"w": jax.random.normal(kw_, (fi, fo), jnp.float32) / np.sqrt(fi),
                "b": 0.1 * jax.random.normal(kb_, (1, fo), jnp.float32)}

    def conv_p(k, fi, fo, h):
        kw_, ka_, kb_ = jax.random.split(k, 3)
        att = 0.1 * jax.random.normal(ka_, (h, 2 * fo), jnp.float32)  # PyG att: [1,H,2F]
        att_x, att_e = att[:, :fo], att[:, fo:]
        return {"w": jax.random.normal(kw_, (fi, h * fo), jnp.float32) / np.sqrt(fi),
                "att_x": att_x, "att_e": att_e,
                "att_x_t": _att_rows(att_x), "att_e_t": _att_rows(att_e),
                "bias": 0.1 * jax.random.normal(kb_, (1, h * fo), jnp.float32)}

    return {
        "lin1": lin_p(keys[0], he_dim, in_ch),
        "conv1": conv_p(keys[1], in_ch, hid, heads[0]),
        "lin2": lin_p(keys[2], in_ch, hid * heads[0]),
        "conv2": conv_p(keys[3], hid * heads[0], hid, heads[1]),
        "lin3": lin_p(keys[4], hid * heads[0], hid * heads[1]),
        "conv3": conv_p(keys[5], hid * heads[1], out_ch, heads[2]),
    }


if __name__ == "__main__":
    in_channels, out_channels, hidden_channels = 8, 4, 8
    hyperedge_features_dim = 6
    heads = (2, 2, 2)
    num_nodes, num_edges = 16, 8

    key = jax.random.PRNGKey(0)
    kx, kw, kf, kp = jax.random.split(key, 4)
    x = jax.random.normal(kx, (num_nodes, in_channels), jnp.float32)
    hyperedge_weight = jax.random.uniform(kw, (num_edges,), jnp.float32, 0.5, 1.5)
    hyperedge_features = jax.random.normal(
        kf, (num_edges, hyperedge_features_dim), jnp.float32)

    # Deterministic incidence: node n belongs to hyperedges n % M and (n + 3) % M.
    nodes = np.arange(num_nodes)
    rows = np.concatenate([nodes, nodes])
    cols = np.concatenate([nodes % num_edges, (nodes + 3) % num_edges])
    hyperedge_index = jnp.asarray(np.stack([rows, cols]), dtype=jnp.int32)  # [2, 32]

    params = init_params(kp, in_channels, hidden_channels, out_channels,
                         hyperedge_features_dim, heads)

    forward = jax.jit(functools.partial(
        hypergraph_net_forward,
        num_nodes=num_nodes, num_edges=num_edges, heads=heads,
        hidden=hidden_channels, out_channels=out_channels))

    out = jax.block_until_ready(forward(params, x, hyperedge_index,
                                        hyperedge_weight, hyperedge_features))

    assert out.shape == (num_nodes, heads[2] * out_channels), out.shape
    assert bool(jnp.all(jnp.isfinite(out)))

    ref = _reference_forward(params, x, hyperedge_index, hyperedge_weight,
                             hyperedge_features, num_nodes=num_nodes,
                             num_edges=num_edges, heads=heads,
                             hidden=hidden_channels, out_channels=out_channels)
    rel_err = float(jnp.max(jnp.abs(out - ref)) / (jnp.max(jnp.abs(ref)) + 1e-6))
    assert rel_err < 5e-2, rel_err   # loose: approx reciprocals vs exact divides

    print("KERNEL_OK")
</pallas_src>

<mosaic_0001>
module attributes {stable_mosaic.version = 11 : i64} {
  func.func @_net_kernel(%arg0: memref<16x8xf32, #tpu.memory_space<vmem>>, %arg1: memref<8x6xf32, #tpu.memory_space<vmem>>, %arg2: memref<8x16xbf16, #tpu.memory_space<vmem>>, %arg3: memref<8x1xf32, #tpu.memory_space<vmem>>, %arg4: memref<6x8xf32, #tpu.memory_space<vmem>>, %arg5: memref<1x8xf32, #tpu.memory_space<vmem>>, %arg6: memref<8x16xf32, #tpu.memory_space<vmem>>, %arg7: memref<1x16xf32, #tpu.memory_space<vmem>>, %arg8: memref<16x16xf32, #tpu.memory_space<vmem>>, %arg9: memref<1x16xf32, #tpu.memory_space<vmem>>, %arg10: memref<8x16xf32, #tpu.memory_space<vmem>>, %arg11: memref<2x16xf32, #tpu.memory_space<vmem>>, %arg12: memref<2x16xf32, #tpu.memory_space<vmem>>, %arg13: memref<1x16xf32, #tpu.memory_space<vmem>>, %arg14: memref<16x16xf32, #tpu.memory_space<vmem>>, %arg15: memref<2x16xf32, #tpu.memory_space<vmem>>, %arg16: memref<2x16xf32, #tpu.memory_space<vmem>>, %arg17: memref<1x16xf32, #tpu.memory_space<vmem>>, %arg18: memref<16x8xf32, #tpu.memory_space<vmem>>, %arg19: memref<2x8xf32, #tpu.memory_space<vmem>>, %arg20: memref<2x8xf32, #tpu.memory_space<vmem>>, %arg21: memref<1x8xf32, #tpu.memory_space<vmem>>, %arg22: memref<16x8xf32, #tpu.memory_space<vmem>>, %arg23: memref<16x16xf32, #tpu.memory_space<vmem>>, %arg24: memref<16x16xf32, #tpu.memory_space<vmem>>) attributes {dimension_semantics = [], scalar_prefetch = 0 : i64, scratch_operands = 2 : i64, tpu.core_type = #tpu.core_type<tc>} {
    %c0 = arith.constant 0 : index
    %c0_0 = arith.constant 0 : index
    %0 = vector.load %arg2[%c0, %c0_0] : memref<8x16xbf16, #tpu.memory_space<vmem>>, vector<8x16xbf16>
    %1 = arith.extf %0 : vector<8x16xbf16> to vector<8x16xf32>
    %cst = arith.constant 0.000000e+00 : f32
    %2 = vector.broadcast %cst : f32 to vector<8x16xf32>
    %3 = arith.cmpf ogt, %1, %2 : vector<8x16xf32>
    %c0_1 = arith.constant 0 : index
    %c0_2 = arith.constant 0 : index
    %4 = vector.load %arg3[%c0_1, %c0_2] : memref<8x1xf32, #tpu.memory_space<vmem>>, vector<8x1xf32>
    %cst_3 = arith.constant dense<0.000000e+00> : vector<8xf32>
    %5 = vector.multi_reduction <add>, %1, %cst_3 [1] : vector<8x16xf32> to vector<8xf32>
    %6 = vector.shape_cast %5 : vector<8xf32> to vector<8x1xf32>
    %cst_4 = arith.constant 0.000000e+00 : f32
    %7 = vector.broadcast %cst_4 : f32 to vector<8x1xf32>
    %8 = arith.cmpf one, %6, %7 : vector<8x1xf32>
    %cst_5 = arith.constant 0.000000e+00 : f32
    %9 = vector.broadcast %cst_5 : f32 to vector<8x1xf32>
    %10 = arith.cmpf one, %6, %9 : vector<8x1xf32>
    %cst_6 = arith.constant 1.000000e+00 : f32
    %11 = vector.broadcast %cst_6 : f32 to vector<8x1xf32>
    %12 = arith.select %10, %6, %11 : vector<8x1xi1>, vector<8x1xf32>
    %13 = tpu.reciprocal %12 {approx = true} : vector<8x1xf32> -> vector<8x1xf32>
    %cst_7 = arith.constant 0.000000e+00 : f32
    %14 = vector.broadcast %cst_7 : f32 to vector<8x1xf32>
    %15 = arith.select %8, %13, %14 : vector<8x1xi1>, vector<8x1xf32>
    %cst_8 = arith.constant dense<0.000000e+00> : vector<16x1xf32>
    %16 = tpu.matmul %1, %4, %cst_8 {dimension_numbers = #tpu.dot_dimension_numbers<[0], [0], [1], [1], [0, 1, 1, 1], [], []>} : vector<8x16xf32>, vector<8x1xf32>, vector<16x1xf32> -> vector<16x1xf32>
    %cst_9 = arith.constant 0.000000e+00 : f32
    %17 = vector.broadcast %cst_9 : f32 to vector<16x1xf32>
    %18 = arith.cmpf one, %16, %17 : vector<16x1xf32>
    %cst_10 = arith.constant 0.000000e+00 : f32
    %19 = vector.broadcast %cst_10 : f32 to vector<16x1xf32>
    %20 = arith.cmpf one, %16, %19 : vector<16x1xf32>
    %cst_11 = arith.constant 1.000000e+00 : f32
    %21 = vector.broadcast %cst_11 : f32 to vector<16x1xf32>
    %22 = arith.select %20, %16, %21 : vector<16x1xi1>, vector<16x1xf32>
    %23 = tpu.reciprocal %22 {approx = true} : vector<16x1xf32> -> vector<16x1xf32>
    %cst_12 = arith.constant 0.000000e+00 : f32
    %24 = vector.broadcast %cst_12 : f32 to vector<16x1xf32>
    %25 = arith.select %18, %23, %24 : vector<16x1xi1>, vector<16x1xf32>
    %c0_13 = arith.constant 0 : index
    %c0_14 = arith.constant 0 : index
    %26 = vector.load %arg0[%c0_13, %c0_14] : memref<16x8xf32, #tpu.memory_space<vmem>>, vector<16x8xf32>
    %c0_15 = arith.constant 0 : index
    %c0_16 = arith.constant 0 : index
    %27 = vector.load %arg1[%c0_15, %c0_16] : memref<8x6xf32, #tpu.memory_space<vmem>>, vector<8x6xf32>
    %c0_17 = arith.constant 0 : index
    %c0_18 = arith.constant 0 : index
    %28 = vector.load %arg4[%c0_17, %c0_18] : memref<6x8xf32, #tpu.memory_space<vmem>>, vector<6x8xf32>
    %cst_19 = arith.constant dense<0.000000e+00> : vector<8x8xf32>
    %29 = tpu.matmul %27, %28, %cst_19 {dimension_numbers = #tpu.dot_dimension_numbers<[1], [0], [0], [1], [0, 0, 1, 1], [], []>} : vector<8x6xf32>, vector<6x8xf32>, vector<8x8xf32> -> vector<8x8xf32>
    %c0_20 = arith.constant 0 : index
    %c0_21 = arith.constant 0 : index
    %30 = vector.load %arg5[%c0_20, %c0_21] : memref<1x8xf32, #tpu.memory_space<vmem>>, vector<1x8xf32>
    %31 = vector.broadcast %30 : vector<1x8xf32> to vector<8x8xf32>
    %32 = arith.addf %29, %31 : vector<8x8xf32>
    %c0_22 = arith.constant 0 : index
    %c0_23 = arith.constant 0 : index
    %33 = vector.load %arg10[%c0_22, %c0_23] : memref<8x16xf32, #tpu.memory_space<vmem>>, vector<8x16xf32>
    %cst_24 = arith.constant dense<0.000000e+00> : vector<16x16xf32>
    %34 = tpu.matmul %26, %33, %cst_24 {dimension_numbers = #tpu.dot_dimension_numbers<[1], [0], [0], [1], [0, 0, 1, 1], [], []>} : vector<16x8xf32>, vector<8x16xf32>, vector<16x16xf32> -> vector<16x16xf32>
    %cst_25 = arith.constant dense<0.000000e+00> : vector<8x16xf32>
    %35 = tpu.matmul %32, %33, %cst_25 {dimension_numbers = #tpu.dot_dimension_numbers<[1], [0], [0], [1], [0, 0, 1, 1], [], []>} : vector<8x8xf32>, vector<8x16xf32>, vector<8x16xf32> -> vector<8x16xf32>
    %c0_26 = arith.constant 0 : index
    %c0_27 = arith.constant 0 : index
    %36 = vector.load %arg11[%c0_26, %c0_27] : memref<2x16xf32, #tpu.memory_space<vmem>>, vector<2x16xf32>
    %cst_28 = arith.constant dense<0.000000e+00> : vector<2x16xf32>
    %37 = tpu.matmul %36, %34, %cst_28 {dimension_numbers = #tpu.dot_dimension_numbers<[1], [1], [0], [0], [0, 0, 1, 0], [], []>} : vector<2x16xf32>, vector<16x16xf32>, vector<2x16xf32> -> vector<2x16xf32>
    %c0_29 = arith.constant 0 : index
    %c0_30 = arith.constant 0 : index
    %38 = vector.load %arg12[%c0_29, %c0_30] : memref<2x16xf32, #tpu.memory_space<vmem>>, vector<2x16xf32>
    %cst_31 = arith.constant dense<0.000000e+00> : vector<8x2xf32>
    %39 = tpu.matmul %35, %38, %cst_31 {dimension_numbers = #tpu.dot_dimension_numbers<[1], [1], [0], [0], [0, 0, 1, 0], [], []>} : vector<8x16xf32>, vector<2x16xf32>, vector<8x2xf32> -> vector<8x2xf32>
    %40 = vector.extract_strided_slice %39 {offsets = [0, 0], sizes = [8, 1], strides = [1, 1]} : vector<8x2xf32> to vector<8x1xf32>
    %41 = vector.extract_strided_slice %37 {offsets = [0, 0], sizes = [1, 16], strides = [1, 1]} : vector<2x16xf32> to vector<1x16xf32>
    %42 = vector.broadcast %40 : vector<8x1xf32> to vector<8x16xf32>
    %43 = vector.broadcast %41 : vector<1x16xf32> to vector<8x16xf32>
    %44 = arith.addf %42, %43 : vector<8x16xf32>
    %cst_32 = arith.constant 0.000000e+00 : f32
    %45 = vector.broadcast %cst_32 : f32 to vector<8x16xf32>
    %46 = arith.maximumf %44, %45 : vector<8x16xf32>
    %cst_33 = arith.constant -1.000000e+30 : f32
    %47 = vector.broadcast %cst_33 : f32 to vector<8x16xf32>
    %48 = arith.select %3, %46, %47 : vector<8x16xi1>, vector<8x16xf32>
    %cst_34 = arith.constant dense<0xFF800000> : vector<8xf32>
    %49 = vector.multi_reduction <maximumf>, %48, %cst_34 [1] : vector<8x16xf32> to vector<8xf32>
    %50 = vector.shape_cast %49 : vector<8xf32> to vector<8x1xf32>
    %51 = vector.broadcast %50 : vector<8x1xf32> to vector<8x16xf32>
    %52 = arith.subf %48, %51 : vector<8x16xf32>
    %53 = math.exp %52 : vector<8x16xf32>
    %54 = arith.mulf %53, %1 : vector<8x16xf32>
    %cst_35 = arith.constant dense<0.000000e+00> : vector<8xf32>
    %55 = vector.multi_reduction <add>, %54, %cst_35 [1] : vector<8x16xf32> to vector<8xf32>
    %56 = vector.shape_cast %55 : vector<8xf32> to vector<8x1xf32>
    %cst_36 = arith.constant 1.000000e-16 : f32
    %57 = vector.broadcast %cst_36 : f32 to vector<8x1xf32>
    %58 = arith.addf %56, %57 : vector<8x1xf32>
    %59 = tpu.reciprocal %58 {approx = true} : vector<8x1xf32> -> vector<8x1xf32>
    %60 = vector.broadcast %59 : vector<8x1xf32> to vector<8x16xf32>
    %61 = arith.mulf %54, %60 : vector<8x16xf32>
    %62 = vector.extract_strided_slice %34 {offsets = [0, 0], sizes = [16, 8], strides = [1, 1]} : vector<16x16xf32> to vector<16x8xf32>
    %cst_37 = arith.constant dense<0.000000e+00> : vector<8x8xf32>
    %63 = tpu.matmul %61, %62, %cst_37 {dimension_numbers = #tpu.dot_dimension_numbers<[1], [0], [0], [1], [0, 0, 1, 1], [], []>} : vector<8x16xf32>, vector<16x8xf32>, vector<8x8xf32> -> vector<8x8xf32>
    %64 = vector.broadcast %15 : vector<8x1xf32> to vector<8x8xf32>
    %65 = arith.mulf %63, %64 : vector<8x8xf32>
    %cst_38 = arith.constant dense<0.000000e+00> : vector<16x8xf32>
    %66 = tpu.matmul %61, %65, %cst_38 {dimension_numbers = #tpu.dot_dimension_numbers<[0], [0], [1], [1], [0, 1, 1, 1], [], []>} : vector<8x16xf32>, vector<8x8xf32>, vector<16x8xf32> -> vector<16x8xf32>
    %67 = vector.broadcast %25 : vector<16x1xf32> to vector<16x8xf32>
    %68 = arith.mulf %66, %67 : vector<16x8xf32>
    %c0_39 = arith.constant 0 : index
    %c0_40 = arith.constant 0 : index
    %69 = vector.load %arg23[%c0_39, %c0_40] : memref<16x16xf32, #tpu.memory_space<vmem>>, vector<16x8xf32>
    tpu.vector_store %arg23[%c0_39, %c0_40], %68 {strides = array<i32>} : memref<16x16xf32, #tpu.memory_space<vmem>>, vector<16x8xf32>,
    %70 = vector.extract_strided_slice %39 {offsets = [0, 1], sizes = [8, 1], strides = [1, 1]} : vector<8x2xf32> to vector<8x1xf32>
    %71 = vector.extract_strided_slice %37 {offsets = [1, 0], sizes = [1, 16], strides = [1, 1]} : vector<2x16xf32> to vector<1x16xf32>
    %72 = vector.broadcast %70 : vector<8x1xf32> to vector<8x16xf32>
    %73 = vector.broadcast %71 : vector<1x16xf32> to vector<8x16xf32>
    %74 = arith.addf %72, %73 : vector<8x16xf32>
    %cst_41 = arith.constant 0.000000e+00 : f32
    %75 = vector.broadcast %cst_41 : f32 to vector<8x16xf32>
    %76 = arith.maximumf %74, %75 : vector<8x16xf32>
    %cst_42 = arith.constant -1.000000e+30 : f32
    %77 = vector.broadcast %cst_42 : f32 to vector<8x16xf32>
    %78 = arith.select %3, %76, %77 : vector<8x16xi1>, vector<8x16xf32>
    %cst_43 = arith.constant dense<0xFF800000> : vector<8xf32>
    %79 = vector.multi_reduction <maximumf>, %78, %cst_43 [1] : vector<8x16xf32> to vector<8xf32>
    %80 = vector.shape_cast %79 : vector<8xf32> to vector<8x1xf32>
    %81 = vector.broadcast %80 : vector<8x1xf32> to vector<8x16xf32>
    %82 = arith.subf %78, %81 : vector<8x16xf32>
    %83 = math.exp %82 : vector<8x16xf32>
    %84 = arith.mulf %83, %1 : vector<8x16xf32>
    %cst_44 = arith.constant dense<0.000000e+00> : vector<8xf32>
    %85 = vector.multi_reduction <add>, %84, %cst_44 [1] : vector<8x16xf32> to vector<8xf32>
    %86 = vector.shape_cast %85 : vector<8xf32> to vector<8x1xf32>
    %cst_45 = arith.constant 1.000000e-16 : f32
    %87 = vector.broadcast %cst_45 : f32 to vector<8x1xf32>
    %88 = arith.addf %86, %87 : vector<8x1xf32>
    %89 = tpu.reciprocal %88 {approx = true} : vector<8x1xf32> -> vector<8x1xf32>
    %90 = vector.broadcast %89 : vector<8x1xf32> to vector<8x16xf32>
    %91 = arith.mulf %84, %90 : vector<8x16xf32>
    %92 = vector.extract_strided_slice %34 {offsets = [0, 8], sizes = [16, 8], strides = [1, 1]} : vector<16x16xf32> to vector<16x8xf32>
    %cst_46 = arith.constant dense<0.000000e+00> : vector<8x8xf32>
    %93 = tpu.matmul %91, %92, %cst_46 {dimension_numbers = #tpu.dot_dimension_numbers<[1], [0], [0], [1], [0, 0, 1, 1], [], []>} : vector<8x16xf32>, vector<16x8xf32>, vector<8x8xf32> -> vector<8x8xf32>
    %94 = vector.broadcast %15 : vector<8x1xf32> to vector<8x8xf32>
    %95 = arith.mulf %93, %94 : vector<8x8xf32>
    %cst_47 = arith.constant dense<0.000000e+00> : vector<16x8xf32>
    %96 = tpu.matmul %91, %95, %cst_47 {dimension_numbers = #tpu.dot_dimension_numbers<[0], [0], [1], [1], [0, 1, 1, 1], [], []>} : vector<8x16xf32>, vector<8x8xf32>, vector<16x8xf32> -> vector<16x8xf32>
    %97 = vector.broadcast %25 : vector<16x1xf32> to vector<16x8xf32>
    %98 = arith.mulf %96, %97 : vector<16x8xf32>
    %c0_48 = arith.constant 0 : index
    %c8 = arith.constant 8 : index
    %99 = vector.load %arg23[%c0_48, %c8] : memref<16x16xf32, #tpu.memory_space<vmem>>, vector<16x8xf32>
    tpu.vector_store %arg23[%c0_48, %c8], %98 {strides = array<i32>} : memref<16x16xf32, #tpu.memory_space<vmem>>, vector<16x8xf32>,
    %c0_49 = arith.constant 0 : index
    %c0_50 = arith.constant 0 : index
    %100 = vector.load %arg23[%c0_49, %c0_50] : memref<16x16xf32, #tpu.memory_space<vmem>>, vector<16x16xf32>
    %c0_51 = arith.constant 0 : index
    %c0_52 = arith.constant 0 : index
    %101 = vector.load %arg13[%c0_51, %c0_52] : memref<1x16xf32, #tpu.memory_space<vmem>>, vector<1x16xf32>
    %102 = vector.broadcast %101 : vector<1x16xf32> to vector<16x16xf32>
    %103 = arith.addf %100, %102 : vector<16x16xf32>
    %c0_53 = arith.constant 0 : index
    %c0_54 = arith.constant 0 : index
    %104 = vector.load %arg23[%c0_53, %c0_54] : memref<16x16xf32, #tpu.memory_space<vmem>>, vector<16x16xf32>
    tpu.vector_store %arg23[%c0_53, %c0_54], %103 {strides = array<i32>} : memref<16x16xf32, #tpu.memory_space<vmem>>, vector<16x16xf32>,
    %c0_55 = arith.constant 0 : index
    %c0_56 = arith.constant 0 : index
    %105 = vector.load %arg6[%c0_55, %c0_56] : memref<8x16xf32, #tpu.memory_space<vmem>>, vector<8x16xf32>
    %cst_57 = arith.constant dense<0.000000e+00> : vector<8x16xf32>
    %106 = tpu.matmul %32, %105, %cst_57 {dimension_numbers = #tpu.dot_dimension_numbers<[1], [0], [0], [1], [0, 0, 1, 1], [], []>} : vector<8x8xf32>, vector<8x16xf32>, vector<8x16xf32> -> vector<8x16xf32>
    %c0_58 = arith.constant 0 : index
    %c0_59 = arith.constant 0 : index
    %107 = vector.load %arg7[%c0_58, %c0_59] : memref<1x16xf32, #tpu.memory_space<vmem>>, vector<1x16xf32>
    %108 = vector.broadcast %107 : vector<1x16xf32> to vector<8x16xf32>
    %109 = arith.addf %106, %108 : vector<8x16xf32>
    %c0_60 = arith.constant 0 : index
    %c0_61 = arith.constant 0 : index
    %110 = vector.load %arg23[%c0_60, %c0_61] : memref<16x16xf32, #tpu.memory_space<vmem>>, vector<16x16xf32>
    %c0_62 = arith.constant 0 : index
    %c0_63 = arith.constant 0 : index
    %111 = vector.load %arg14[%c0_62, %c0_63] : memref<16x16xf32, #tpu.memory_space<vmem>>, vector<16x16xf32>
    %cst_64 = arith.constant dense<0.000000e+00> : vector<16x16xf32>
    %112 = tpu.matmul %110, %111, %cst_64 {dimension_numbers = #tpu.dot_dimension_numbers<[1], [0], [0], [1], [0, 0, 1, 1], [], []>} : vector<16x16xf32>, vector<16x16xf32>, vector<16x16xf32> -> vector<16x16xf32>
    %cst_65 = arith.constant dense<0.000000e+00> : vector<8x16xf32>
    %113 = tpu.matmul %109, %111, %cst_65 {dimension_numbers = #tpu.dot_dimension_numbers<[1], [0], [0], [1], [0, 0, 1, 1], [], []>} : vector<8x16xf32>, vector<16x16xf32>, vector<8x16xf32> -> vector<8x16xf32>
    %c0_66 = arith.constant 0 : index
    %c0_67 = arith.constant 0 : index
    %114 = vector.load %arg15[%c0_66, %c0_67] : memref<2x16xf32, #tpu.memory_space<vmem>>, vector<2x16xf32>
    %cst_68 = arith.constant dense<0.000000e+00> : vector<2x16xf32>
    %115 = tpu.matmul %114, %112, %cst_68 {dimension_numbers = #tpu.dot_dimension_numbers<[1], [1], [0], [0], [0, 0, 1, 0], [], []>} : vector<2x16xf32>, vector<16x16xf32>, vector<2x16xf32> -> vector<2x16xf32>
    %c0_69 = arith.constant 0 : index
    %c0_70 = arith.constant 0 : index
    %116 = vector.load %arg16[%c0_69, %c0_70] : memref<2x16xf32, #tpu.memory_space<vmem>>, vector<2x16xf32>
    %cst_71 = arith.constant dense<0.000000e+00> : vector<8x2xf32>
    %117 = tpu.matmul %113, %116, %cst_71 {dimension_numbers = #tpu.dot_dimension_numbers<[1], [1], [0], [0], [0, 0, 1, 0], [], []>} : vector<8x16xf32>, vector<2x16xf32>, vector<8x2xf32> -> vector<8x2xf32>
    %118 = vector.extract_strided_slice %117 {offsets = [0, 0], sizes = [8, 1], strides = [1, 1]} : vector<8x2xf32> to vector<8x1xf32>
    %119 = vector.extract_strided_slice %115 {offsets = [0, 0], sizes = [1, 16], strides = [1, 1]} : vector<2x16xf32> to vector<1x16xf32>
    %120 = vector.broadcast %118 : vector<8x1xf32> to vector<8x16xf32>
    %121 = vector.broadcast %119 : vector<1x16xf32> to vector<8x16xf32>
    %122 = arith.addf %120, %121 : vector<8x16xf32>
    %cst_72 = arith.constant 0.000000e+00 : f32
    %123 = vector.broadcast %cst_72 : f32 to vector<8x16xf32>
    %124 = arith.maximumf %122, %123 : vector<8x16xf32>
    %cst_73 = arith.constant -1.000000e+30 : f32
    %125 = vector.broadcast %cst_73 : f32 to vector<8x16xf32>
    %126 = arith.select %3, %124, %125 : vector<8x16xi1>, vector<8x16xf32>
    %cst_74 = arith.constant dense<0xFF800000> : vector<8xf32>
    %127 = vector.multi_reduction <maximumf>, %126, %cst_74 [1] : vector<8x16xf32> to vector<8xf32>
    %128 = vector.shape_cast %127 : vector<8xf32> to vector<8x1xf32>
    %129 = vector.broadcast %128 : vector<8x1xf32> to vector<8x16xf32>
    %130 = arith.subf %126, %129 : vector<8x16xf32>
    %131 = math.exp %130 : vector<8x16xf32>
    %132 = arith.mulf %131, %1 : vector<8x16xf32>
    %cst_75 = arith.constant dense<0.000000e+00> : vector<8xf32>
    %133 = vector.multi_reduction <add>, %132, %cst_75 [1] : vector<8x16xf32> to vector<8xf32>
    %134 = vector.shape_cast %133 : vector<8xf32> to vector<8x1xf32>
    %cst_76 = arith.constant 1.000000e-16 : f32
    %135 = vector.broadcast %cst_76 : f32 to vector<8x1xf32>
    %136 = arith.addf %134, %135 : vector<8x1xf32>
    %137 = tpu.reciprocal %136 {approx = true} : vector<8x1xf32> -> vector<8x1xf32>
    %138 = vector.broadcast %137 : vector<8x1xf32> to vector<8x16xf32>
    %139 = arith.mulf %132, %138 : vector<8x16xf32>
    %140 = vector.extract_strided_slice %112 {offsets = [0, 0], sizes = [16, 8], strides = [1, 1]} : vector<16x16xf32> to vector<16x8xf32>
    %cst_77 = arith.constant dense<0.000000e+00> : vector<8x8xf32>
    %141 = tpu.matmul %139, %140, %cst_77 {dimension_numbers = #tpu.dot_dimension_numbers<[1], [0], [0], [1], [0, 0, 1, 1], [], []>} : vector<8x16xf32>, vector<16x8xf32>, vector<8x8xf32> -> vector<8x8xf32>
    %142 = vector.broadcast %15 : vector<8x1xf32> to vector<8x8xf32>
    %143 = arith.mulf %141, %142 : vector<8x8xf32>
    %cst_78 = arith.constant dense<0.000000e+00> : vector<16x8xf32>
    %144 = tpu.matmul %139, %143, %cst_78 {dimension_numbers = #tpu.dot_dimension_numbers<[0], [0], [1], [1], [0, 1, 1, 1], [], []>} : vector<8x16xf32>, vector<8x8xf32>, vector<16x8xf32> -> vector<16x8xf32>
    %145 = vector.broadcast %25 : vector<16x1xf32> to vector<16x8xf32>
    %146 = arith.mulf %144, %145 : vector<16x8xf32>
    %c0_79 = arith.constant 0 : index
    %c0_80 = arith.constant 0 : index
    %147 = vector.load %arg24[%c0_79, %c0_80] : memref<16x16xf32, #tpu.memory_space<vmem>>, vector<16x8xf32>
    tpu.vector_store %arg24[%c0_79, %c0_80], %146 {strides = array<i32>} : memref<16x16xf32, #tpu.memory_space<vmem>>, vector<16x8xf32>,
    %148 = vector.extract_strided_slice %117 {offsets = [0, 1], sizes = [8, 1], strides = [1, 1]} : vector<8x2xf32> to vector<8x1xf32>
    %149 = vector.extract_strided_slice %115 {offsets = [1, 0], sizes = [1, 16], strides = [1, 1]} : vector<2x16xf32> to vector<1x16xf32>
    %150 = vector.broadcast %148 : vector<8x1xf32> to vector<8x16xf32>
    %151 = vector.broadcast %149 : vector<1x16xf32> to vector<8x16xf32>
    %152 = arith.addf %150, %151 : vector<8x16xf32>
    %cst_81 = arith.constant 0.000000e+00 : f32
    %153 = vector.broadcast %cst_81 : f32 to vector<8x16xf32>
    %154 = arith.maximumf %152, %153 : vector<8x16xf32>
    %cst_82 = arith.constant -1.000000e+30 : f32
    %155 = vector.broadcast %cst_82 : f32 to vector<8x16xf32>
    %156 = arith.select %3, %154, %155 : vector<8x16xi1>, vector<8x16xf32>
    %cst_83 = arith.constant dense<0xFF800000> : vector<8xf32>
    %157 = vector.multi_reduction <maximumf>, %156, %cst_83 [1] : vector<8x16xf32> to vector<8xf32>
    %158 = vector.shape_cast %157 : vector<8xf32> to vector<8x1xf32>
    %159 = vector.broadcast %158 : vector<8x1xf32> to vector<8x16xf32>
    %160 = arith.subf %156, %159 : vector<8x16xf32>
    %161 = math.exp %160 : vector<8x16xf32>
    %162 = arith.mulf %161, %1 : vector<8x16xf32>
    %cst_84 = arith.constant dense<0.000000e+00> : vector<8xf32>
    %163 = vector.multi_reduction <add>, %162, %cst_84 [1] : vector<8x16xf32> to vector<8xf32>
    %164 = vector.shape_cast %163 : vector<8xf32> to vector<8x1xf32>
    %cst_85 = arith.constant 1.000000e-16 : f32
    %165 = vector.broadcast %cst_85 : f32 to vector<8x1xf32>
    %166 = arith.addf %164, %165 : vector<8x1xf32>
    %167 = tpu.reciprocal %166 {approx = true} : vector<8x1xf32> -> vector<8x1xf32>
    %168 = vector.broadcast %167 : vector<8x1xf32> to vector<8x16xf32>
    %169 = arith.mulf %162, %168 : vector<8x16xf32>
    %170 = vector.extract_strided_slice %112 {offsets = [0, 8], sizes = [16, 8], strides = [1, 1]} : vector<16x16xf32> to vector<16x8xf32>
    %cst_86 = arith.constant dense<0.000000e+00> : vector<8x8xf32>
    %171 = tpu.matmul %169, %170, %cst_86 {dimension_numbers = #tpu.dot_dimension_numbers<[1], [0], [0], [1], [0, 0, 1, 1], [], []>} : vector<8x16xf32>, vector<16x8xf32>, vector<8x8xf32> -> vector<8x8xf32>
    %172 = vector.broadcast %15 : vector<8x1xf32> to vector<8x8xf32>
    %173 = arith.mulf %171, %172 : vector<8x8xf32>
    %cst_87 = arith.constant dense<0.000000e+00> : vector<16x8xf32>
    %174 = tpu.matmul %169, %173, %cst_87 {dimension_numbers = #tpu.dot_dimension_numbers<[0], [0], [1], [1], [0, 1, 1, 1], [], []>} : vector<8x16xf32>, vector<8x8xf32>, vector<16x8xf32> -> vector<16x8xf32>
    %175 = vector.broadcast %25 : vector<16x1xf32> to vector<16x8xf32>
    %176 = arith.mulf %174, %175 : vector<16x8xf32>
    %c0_88 = arith.constant 0 : index
    %c8_89 = arith.constant 8 : index
    %177 = vector.load %arg24[%c0_88, %c8_89] : memref<16x16xf32, #tpu.memory_space<vmem>>, vector<16x8xf32>
    tpu.vector_store %arg24[%c0_88, %c8_89], %176 {strides = array<i32>} : memref<16x16xf32, #tpu.memory_space<vmem>>, vector<16x8xf32>,
    %c0_90 = arith.constant 0 : index
    %c0_91 = arith.constant 0 : index
    %178 = vector.load %arg24[%c0_90, %c0_91] : memref<16x16xf32, #tpu.memory_space<vmem>>, vector<16x16xf32>
    %c0_92 = arith.constant 0 : index
    %c0_93 = arith.constant 0 : index
    %179 = vector.load %arg17[%c0_92, %c0_93] : memref<1x16xf32, #tpu.memory_space<vmem>>, vector<1x16xf32>
    %180 = vector.broadcast %179 : vector<1x16xf32> to vector<16x16xf32>
    %181 = arith.addf %178, %180 : vector<16x16xf32>
    %c0_94 = arith.constant 0 : index
    %c0_95 = arith.constant 0 : index
    %182 = vector.load %arg24[%c0_94, %c0_95] : memref<16x16xf32, #tpu.memory_space<vmem>>, vector<16x16xf32>
    tpu.vector_store %arg24[%c0_94, %c0_95], %181 {strides = array<i32>} : memref<16x16xf32, #tpu.memory_space<vmem>>, vector<16x16xf32>,
    %c0_96 = arith.constant 0 : index
    %c0_97 = arith.constant 0 : index
    %183 = vector.load %arg8[%c0_96, %c0_97] : memref<16x16xf32, #tpu.memory_space<vmem>>, vector<16x16xf32>
    %cst_98 = arith.constant dense<0.000000e+00> : vector<8x16xf32>
    %184 = tpu.matmul %109, %183, %cst_98 {dimension_numbers = #tpu.dot_dimension_numbers<[1], [0], [0], [1], [0, 0, 1, 1], [], []>} : vector<8x16xf32>, vector<16x16xf32>, vector<8x16xf32> -> vector<8x16xf32>
    %c0_99 = arith.constant 0 : index
    %c0_100 = arith.constant 0 : index
    %185 = vector.load %arg9[%c0_99, %c0_100] : memref<1x16xf32, #tpu.memory_space<vmem>>, vector<1x16xf32>
    %186 = vector.broadcast %185 : vector<1x16xf32> to vector<8x16xf32>
    %187 = arith.addf %184, %186 : vector<8x16xf32>
    %c0_101 = arith.constant 0 : index
    %c0_102 = arith.constant 0 : index
    %188 = vector.load %arg24[%c0_101, %c0_102] : memref<16x16xf32, #tpu.memory_space<vmem>>, vector<16x16xf32>
    %c0_103 = arith.constant 0 : index
    %c0_104 = arith.constant 0 : index
    %189 = vector.load %arg18[%c0_103, %c0_104] : memref<16x8xf32, #tpu.memory_space<vmem>>, vector<16x8xf32>
    %cst_105 = arith.constant dense<0.000000e+00> : vector<16x8xf32>
    %190 = tpu.matmul %188, %189, %cst_105 {dimension_numbers = #tpu.dot_dimension_numbers<[1], [0], [0], [1], [0, 0, 1, 1], [], []>} : vector<16x16xf32>, vector<16x8xf32>, vector<16x8xf32> -> vector<16x8xf32>
    %cst_106 = arith.constant dense<0.000000e+00> : vector<8x8xf32>
    %191 = tpu.matmul %187, %189, %cst_106 {dimension_numbers = #tpu.dot_dimension_numbers<[1], [0], [0], [1], [0, 0, 1, 1], [], []>} : vector<8x16xf32>, vector<16x8xf32>, vector<8x8xf32> -> vector<8x8xf32>
    %c0_107 = arith.constant 0 : index
    %c0_108 = arith.constant 0 : index
    %192 = vector.load %arg19[%c0_107, %c0_108] : memref<2x8xf32, #tpu.memory_space<vmem>>, vector<2x8xf32>
    %cst_109 = arith.constant dense<0.000000e+00> : vector<2x16xf32>
    %193 = tpu.matmul %192, %190, %cst_109 {dimension_numbers = #tpu.dot_dimension_numbers<[1], [1], [0], [0], [0, 0, 1, 0], [], []>} : vector<2x8xf32>, vector<16x8xf32>, vector<2x16xf32> -> vector<2x16xf32>
    %c0_110 = arith.constant 0 : index
    %c0_111 = arith.constant 0 : index
    %194 = vector.load %arg20[%c0_110, %c0_111] : memref<2x8xf32, #tpu.memory_space<vmem>>, vector<2x8xf32>
    %cst_112 = arith.constant dense<0.000000e+00> : vector<8x2xf32>
    %195 = tpu.matmul %191, %194, %cst_112 {dimension_numbers = #tpu.dot_dimension_numbers<[1], [1], [0], [0], [0, 0, 1, 0], [], []>} : vector<8x8xf32>, vector<2x8xf32>, vector<8x2xf32> -> vector<8x2xf32>
    %196 = vector.extract_strided_slice %195 {offsets = [0, 0], sizes = [8, 1], strides = [1, 1]} : vector<8x2xf32> to vector<8x1xf32>
    %197 = vector.extract_strided_slice %193 {offsets = [0, 0], sizes = [1, 16], strides = [1, 1]} : vector<2x16xf32> to vector<1x16xf32>
    %198 = vector.broadcast %196 : vector<8x1xf32> to vector<8x16xf32>
    %199 = vector.broadcast %197 : vector<1x16xf32> to vector<8x16xf32>
    %200 = arith.addf %198, %199 : vector<8x16xf32>
    %cst_113 = arith.constant 0.000000e+00 : f32
    %201 = vector.broadcast %cst_113 : f32 to vector<8x16xf32>
    %202 = arith.maximumf %200, %201 : vector<8x16xf32>
    %cst_114 = arith.constant -1.000000e+30 : f32
    %203 = vector.broadcast %cst_114 : f32 to vector<8x16xf32>
    %204 = arith.select %3, %202, %203 : vector<8x16xi1>, vector<8x16xf32>
    %cst_115 = arith.constant dense<0xFF800000> : vector<8xf32>
    %205 = vector.multi_reduction <maximumf>, %204, %cst_115 [1] : vector<8x16xf32> to vector<8xf32>
    %206 = vector.shape_cast %205 : vector<8xf32> to vector<8x1xf32>
    %207 = vector.broadcast %206 : vector<8x1xf32> to vector<8x16xf32>
    %208 = arith.subf %204, %207 : vector<8x16xf32>
    %209 = math.exp %208 : vector<8x16xf32>
    %210 = arith.mulf %209, %1 : vector<8x16xf32>
    %cst_116 = arith.constant dense<0.000000e+00> : vector<8xf32>
    %211 = vector.multi_reduction <add>, %210, %cst_116 [1] : vector<8x16xf32> to vector<8xf32>
    %212 = vector.shape_cast %211 : vector<8xf32> to vector<8x1xf32>
    %cst_117 = arith.constant 1.000000e-16 : f32
    %213 = vector.broadcast %cst_117 : f32 to vector<8x1xf32>
    %214 = arith.addf %212, %213 : vector<8x1xf32>
    %215 = tpu.reciprocal %214 {approx = true} : vector<8x1xf32> -> vector<8x1xf32>
    %216 = vector.broadcast %215 : vector<8x1xf32> to vector<8x16xf32>
    %217 = arith.mulf %210, %216 : vector<8x16xf32>
    %218 = vector.extract_strided_slice %190 {offsets = [0, 0], sizes = [16, 4], strides = [1, 1]} : vector<16x8xf32> to vector<16x4xf32>
    %cst_118 = arith.constant dense<0.000000e+00> : vector<8x4xf32>
    %219 = tpu.matmul %217, %218, %cst_118 {dimension_numbers = #tpu.dot_dimension_numbers<[1], [0], [0], [1], [0, 0, 1, 1], [], []>} : vector<8x16xf32>, vector<16x4xf32>, vector<8x4xf32> -> vector<8x4xf32>
    %220 = vector.broadcast %15 : vector<8x1xf32> to vector<8x4xf32>
    %221 = arith.mulf %219, %220 : vector<8x4xf32>
    %cst_119 = arith.constant dense<0.000000e+00> : vector<16x4xf32>
    %222 = tpu.matmul %217, %221, %cst_119 {dimension_numbers = #tpu.dot_dimension_numbers<[0], [0], [1], [1], [0, 1, 1, 1], [], []>} : vector<8x16xf32>, vector<8x4xf32>, vector<16x4xf32> -> vector<16x4xf32>
    %223 = vector.broadcast %25 : vector<16x1xf32> to vector<16x4xf32>
    %224 = arith.mulf %222, %223 : vector<16x4xf32>
    %c0_120 = arith.constant 0 : index
    %c0_121 = arith.constant 0 : index
    %225 = vector.load %arg22[%c0_120, %c0_121] : memref<16x8xf32, #tpu.memory_space<vmem>>, vector<16x4xf32>
    tpu.vector_store %arg22[%c0_120, %c0_121], %224 {strides = array<i32>} : memref<16x8xf32, #tpu.memory_space<vmem>>, vector<16x4xf32>,
    %226 = vector.extract_strided_slice %195 {offsets = [0, 1], sizes = [8, 1], strides = [1, 1]} : vector<8x2xf32> to vector<8x1xf32>
    %227 = vector.extract_strided_slice %193 {offsets = [1, 0], sizes = [1, 16], strides = [1, 1]} : vector<2x16xf32> to vector<1x16xf32>
    %228 = vector.broadcast %226 : vector<8x1xf32> to vector<8x16xf32>
    %229 = vector.broadcast %227 : vector<1x16xf32> to vector<8x16xf32>
    %230 = arith.addf %228, %229 : vector<8x16xf32>
    %cst_122 = arith.constant 0.000000e+00 : f32
    %231 = vector.broadcast %cst_122 : f32 to vector<8x16xf32>
    %232 = arith.maximumf %230, %231 : vector<8x16xf32>
    %cst_123 = arith.constant -1.000000e+30 : f32
    %233 = vector.broadcast %cst_123 : f32 to vector<8x16xf32>
    %234 = arith.select %3, %232, %233 : vector<8x16xi1>, vector<8x16xf32>
    %cst_124 = arith.constant dense<0xFF800000> : vector<8xf32>
    %235 = vector.multi_reduction <maximumf>, %234, %cst_124 [1] : vector<8x16xf32> to vector<8xf32>
    %236 = vector.shape_cast %235 : vector<8xf32> to vector<8x1xf32>
    %237 = vector.broadcast %236 : vector<8x1xf32> to vector<8x16xf32>
    %238 = arith.subf %234, %237 : vector<8x16xf32>
    %239 = math.exp %238 : vector<8x16xf32>
    %240 = arith.mulf %239, %1 : vector<8x16xf32>
    %cst_125 = arith.constant dense<0.000000e+00> : vector<8xf32>
    %241 = vector.multi_reduction <add>, %240, %cst_125 [1] : vector<8x16xf32> to vector<8xf32>
    %242 = vector.shape_cast %241 : vector<8xf32> to vector<8x1xf32>
    %cst_126 = arith.constant 1.000000e-16 : f32
    %243 = vector.broadcast %cst_126 : f32 to vector<8x1xf32>
    %244 = arith.addf %242, %243 : vector<8x1xf32>
    %245 = tpu.reciprocal %244 {approx = true} : vector<8x1xf32> -> vector<8x1xf32>
    %246 = vector.broadcast %245 : vector<8x1xf32> to vector<8x16xf32>
    %247 = arith.mulf %240, %246 : vector<8x16xf32>
    %248 = vector.extract_strided_slice %190 {offsets = [0, 4], sizes = [16, 4], strides = [1, 1]} : vector<16x8xf32> to vector<16x4xf32>
    %cst_127 = arith.constant dense<0.000000e+00> : vector<8x4xf32>
    %249 = tpu.matmul %247, %248, %cst_127 {dimension_numbers = #tpu.dot_dimension_numbers<[1], [0], [0], [1], [0, 0, 1, 1], [], []>} : vector<8x16xf32>, vector<16x4xf32>, vector<8x4xf32> -> vector<8x4xf32>
    %250 = vector.broadcast %15 : vector<8x1xf32> to vector<8x4xf32>
    %251 = arith.mulf %249, %250 : vector<8x4xf32>
    %cst_128 = arith.constant dense<0.000000e+00> : vector<16x4xf32>
    %252 = tpu.matmul %247, %251, %cst_128 {dimension_numbers = #tpu.dot_dimension_numbers<[0], [0], [1], [1], [0, 1, 1, 1], [], []>} : vector<8x16xf32>, vector<8x4xf32>, vector<16x4xf32> -> vector<16x4xf32>
    %253 = vector.broadcast %25 : vector<16x1xf32> to vector<16x4xf32>
    %254 = arith.mulf %252, %253 : vector<16x4xf32>
    %c0_129 = arith.constant 0 : index
    %c4 = arith.constant 4 : index
    %255 = vector.load %arg22[%c0_129, %c4] : memref<16x8xf32, #tpu.memory_space<vmem>>, vector<16x4xf32>
    tpu.vector_store %arg22[%c0_129, %c4], %254 {strides = array<i32>} : memref<16x8xf32, #tpu.memory_space<vmem>>, vector<16x4xf32>,
    %c0_130 = arith.constant 0 : index
    %c0_131 = arith.constant 0 : index
    %256 = vector.load %arg22[%c0_130, %c0_131] : memref<16x8xf32, #tpu.memory_space<vmem>>, vector<16x8xf32>
    %c0_132 = arith.constant 0 : index
    %c0_133 = arith.constant 0 : index
    %257 = vector.load %arg21[%c0_132, %c0_133] : memref<1x8xf32, #tpu.memory_space<vmem>>, vector<1x8xf32>
    %258 = vector.broadcast %257 : vector<1x8xf32> to vector<16x8xf32>
    %259 = arith.addf %256, %258 : vector<16x8xf32>
    %c0_134 = arith.constant 0 : index
    %c0_135 = arith.constant 0 : index
    %260 = vector.load %arg22[%c0_134, %c0_135] : memref<16x8xf32, #tpu.memory_space<vmem>>, vector<16x8xf32>
    tpu.vector_store %arg22[%c0_134, %c0_135], %259 {strides = array<i32>} : memref<16x8xf32, #tpu.memory_space<vmem>>, vector<16x8xf32>,
    return
  }
}

</mosaic_0001>

<bundles_post_ra>
// kernel: hypergraph_net_forward.1
= control target key start
LH: loop header
LB: loop body
LE: loop exit
PB: predicated region body
PF: predicated region fallthrough
CT: control target
= control target key end

     0   :  { %vm165_vm0 = vcmask 1045504   ;;  %vm161_vm1 = vcmask 48128   ;;  %vm115_vm2 = vcmask 64512   ;;  %vm75_vm3 = vcmask 130048   ;;  %s1807_s4 = inlined_call_operand.vmem [shape: f32[6,8], index: 4, kind: input, shape index: {}]   ;;  %s1808_s1 = inlined_call_operand.vmem [shape: f32[8,6], index: 1, kind: input, shape index: {}]   ;;  %s1809_s5 = inlined_call_operand.vmem [shape: f32[1,8], index: 5, kind: input, shape index: {}]   ;;  %s1810_s10 = inlined_call_operand.vmem [shape: f32[8,16], index: 10, kind: input, shape index: {}]   ;;  %s1811_s0 = inlined_call_operand.vmem [shape: f32[16,8], index: 0, kind: input, shape index: {}]   ;;  %s1812_s12 = inlined_call_operand.vmem [shape: f32[2,16], index: 12, kind: input, shape index: {}]   ;;  %s1813_s3 = inlined_call_operand.vmem [shape: f32[8,1], index: 3, kind: input, shape index: {}]   ;;  %s1814_s11 = inlined_call_operand.vmem [shape: f32[2,16], index: 11, kind: input, shape index: {}]   ;;  %s1815_s2 = inlined_call_operand.vmem [shape: bf16[8,16], index: 2, kind: input, shape index: {}]   ;;  %s1816_s6 = inlined_call_operand.vmem [shape: f32[8,16], index: 6, kind: input, shape index: {}]   ;;  %s1817_s7 = inlined_call_operand.vmem [shape: f32[1,16], index: 7, kind: input, shape index: {}]   ;;  %s1818_s14 = inlined_call_operand.vmem [shape: f32[16,16], index: 14, kind: input, shape index: {}]   ;;  %s1819_s13 = inlined_call_operand.vmem [shape: f32[1,16], index: 13, kind: input, shape index: {}]   ;;  %s1820_s16 = inlined_call_operand.vmem [shape: f32[2,16], index: 16, kind: input, shape index: {}]   ;;  %s1821_s15 = inlined_call_operand.vmem [shape: f32[2,16], index: 15, kind: input, shape index: {}]   ;;  %s1822_s8 = inlined_call_operand.vmem [shape: f32[16,16], index: 8, kind: input, shape index: {}]   ;;  %s1823_s9 = inlined_call_operand.vmem [shape: f32[1,16], index: 9, kind: input, shape index: {}]   ;;  %s1824_s18 = inlined_call_operand.vmem [shape: f32[16,8], index: 18, kind: input, shape index: {}]   ;;  %s1825_s20 = inlined_call_operand.vmem [shape: f32[2,8], index: 20, kind: input, shape index: {}]   ;;  %s1826_s17 = inlined_call_operand.vmem [shape: f32[1,16], index: 17, kind: input, shape index: {}]   ;;  %s1827_s19 = inlined_call_operand.vmem [shape: f32[2,8], index: 19, kind: input, shape index: {}]   ;;  %s1828_s21 = inlined_call_operand.vmem [shape: f32[1,8], index: 21, kind: input, shape index: {}]   ;;  %s1829_s22 = inlined_call_operand.vmem [shape: f32[16,8], index: 22, kind: output, shape index: {}]  }
   0x1   :  { %1831 = sst [smem:[#allocation4_spill]] %s1807_s4  ;;  %v1441_v11 = vmov 1   ;;  %v1442_v12 = vmov 0   ;;  %v242_v14 = vld [vmem:[%s1814_s11] sm:$0x3]  ;;  %vm542_vm8 = vcmask 130112  }
   0x2   :  { %1832 = sst [smem:[#allocation5_spill]] %s1808_s1  ;;  %1383 = vset.pattern.permute.xlu0 %v1441_v11  ;;  %1384 = vset.pattern.permute.xlu1 %v1442_v12  ;;  %v71_v18 = vld [vmem:[%s1815_s2] sm:$0xf]  ;;  %s1443_s2 = smov 120   ;;  %vm1186_vm9 = vcmask 31744   ;;  %vm1311_vm10 = vcmask 64544  }
   0x3   :  { %1833 = sst [smem:[#allocation6_spill]] %s1809_s5  ;;  %v1605_v21 = vunpack.c.l.bf16 %v71_v18  ;;  %v555_v55 = vld [vmem:[%s1816_s6] sm:$0xff]  ;;  %s1446_s5 = smov 4  }
   0x4   :  { %1834 = sst [smem:[#allocation7_spill]] %s1810_s10 }
   0x5   :  { %1835 = sst [smem:[#allocation8_spill]] %s1811_s0  ;;  %vm73_vm4 = vcmp.gt.f32.partialorder %v1605_v21, 0.0  ;;  %v76_v35 = vsel %vm75_vm3, %v1605_v21, 0.0 }
   0x6   :  { %1836 = sst [smem:[#allocation9_spill]] %s1812_s12 }
   0x7   :  { %1837 = sst [smem:[#allocation10_spill]] %s1813_s3 }
   0x8   :  { %s1838_s29 = sld [smem:[#allocation4_spill]] }
   0x9   :  { %s1839_s4 = sld [smem:[#allocation5_spill]] }
   0xa   :  { %s1840_s12 = sld [smem:[#allocation7_spill]] }
   0xb   :  { %s1841_s25 = sld [smem:[#allocation8_spill]] }
   0xc   :  { %s1842_s27 = sld [smem:[#allocation9_spill]] }
   0xd   :  { %s1843_s0 = sld [smem:[#allocation6_spill]] }
   0xe   :  { %v156_v0 = vld [vmem:[%s1838_s29] sm:$0x3f]  ;;  %s1844_s1 = sld [smem:[#allocation10_spill]] }
   0xf   :  { %v155_v1 = vld [vmem:[%s1839_s4] sm:$0xff]  ;;  %1330 = vmatpush.msk.msra.mxu1 %vm165_vm0, %v156_v0 }
  0x10   :  { %1331 = vmatmul.msk.f32.vlgmr.msra.gmra.mxu1 %vm161_vm1, %v155_v1  ;;  %v189_v2 = vld [vmem:[%s1840_s12] sm:$0xff] }
  0x11   :  { %237 = vmatpush.msra.mxu3 %v189_v2  ;;  %211 = vmatpush.msra.mxu2 %v189_v2  ;;  %v153_v3 = vld [vmem:[%s1841_s25] sm:$0xff]  ;;  %v154_v5 = vld [vmem:[%s1841_s25 + $0x8] sm:$0xff] }
  0x12   :  { %v272_v4 = vld [vmem:[%s1842_s27] sm:$0x3]  ;;  %1332 = vmatmul.msk.f32.vlgmr.msra.gmra.mxu2 %vm115_vm2, %v153_v3 }
  0x13   :  { %1338 = vmatpush.xpose.msk.msrb.mxu3 %vm75_vm3, %v272_v4  ;;  %v1405_v6 = vld [vmem:[%s1843_s0] ss:$0 sm:$0xff] }
  0x14   :  { %v74_v10 = vld [vmem:[%s1844_s1] sm:$0xff] }
  0x15   :  { %137 = vmatpush.msra.mxu0 %v74_v10  ;;  %v582_v10 = vld [vmem:[%s1818_s14] sm:$0xff] }
  0x1a   :  { %1333 = vmatmul.msk.f32.gmra.mxu2 %vm115_vm2, %v154_v5 }
  0x8d   :  { %v186_v7 = vpop.f32.mrf.mxu1 }
  0x8e   :  { %v1586_v8 = vadd.f32 %v1405_v6, %v186_v7 }
  0x90   :  { %1334 = vmatmul.msk.f32.vlgmr.msra.gmra.mxu3 %vm115_vm2, %v1586_v8 }
  0x95   :  { %v213_v9 = vpop.f32.mrf.mxu2 }
  0x9d   :  { %v216_v13 = vpop.f32.mrf.mxu2 }
  0x9e   :  { %1335 = vmatpush.xpose.msk.msrb.mxu1 %vm75_vm3, %v216_v13  ;;  %338 = vmatpush.msrb.mxu0 %v216_v13  ;;  %v1385_v39 = vpack.i.bf16 %v213_v9, %v216_v13 }
  0xa0   :  { %339 = vmatpush.msrb.mxu0 %v213_v9 }
  0xa2   :  { %1336 = vmatpush.xpose.msk.msrb.mxu1 %vm75_vm3, %v213_v9  ;;  %v583_v9 = vld [vmem:[%s1818_s14 + $0x8] sm:$0xff] }
  0xa5   :  { %1337 = vmatmul.msk.f32.vlgmr.msrb.gmra.mxu1 %vm75_vm3, %v242_v14 }
 0x113   :  { %v239_v15 = vpop.f32.mrf.mxu3 }
 0x114   :  { %1339 = vmatmul.msk.f32.vlgmr.msrb.gmra.mxu3 %vm75_vm3, %v239_v15 }
 0x122   :  { %v269_v17 = vpop.f32.mrf.mxu1 }
 0x123   :  { %v304_v19 = vperm.slane %v269_v17, 0  ;;  %v424_v20 = vperm.slane %v269_v17, 1  ;;  %v1406_v17 = vld [vmem:[%s1817_s7] ss:$0 sm:$0xff]  ;;  %s1444_s7 = smov 8  }
 0x197   :  { %v296_v16 = vpop.f32.mrf.mxu3 }
 0x198   :  { %301 = vperm.xlu1 %1384, %v296_v16   ;;  %421 = vperm.xlu0 %1383, %v296_v16  }
 0x20a   :  { %v302_v22 = vpop.permute.xlu1 %301  ;;  %v422_v23 = vpop.permute.xlu0 %421 }
 0x20b   :  { %v305_v24 = vadd.f32 %v304_v19, %v302_v22  ;;  %v425_v25 = vadd.f32 %v424_v20, %v422_v23  ;;  %v666_v23 = vld [vmem:[%s1820_s16] sm:$0x3] }
 0x20d   :  { %v306_v26 = vmax.f32 %v305_v24, 0.0  ;;  %v426_v27 = vmax.f32 %v425_v25, 0.0 }
 0x20f   :  { %v427_v28 = vsel %vm73_vm4, %v426_v27, -1e+30  ;;  %v307_v29 = vsel %vm73_vm4, %v306_v26, -1e+30 }
 0x210   :  { %v428_v30 = vsel %vm75_vm3, %v427_v28, -inf  ;;  %v308_v31 = vsel %vm75_vm3, %v307_v29, -inf }
 0x211   :  { %429 = vmax.xlane.f32.xlu0 %v428_v30  ;;  %309 = vmax.xlane.f32.xlu1 %v308_v31 }
 0x219   :  { %77 = vadd.xlane.f32.xlu1 %v76_v35 }
 0x23a   :  { %83 = vxpose.xlu0.b32.start.end [1/1] (short) (narrow) %v1605_v21, 16 }
 0x284   :  { %v430_v32 = vpop.xlane.xlu0 %429  ;;  %v310_v40 = vpop.xlane.xlu1 %309 }
 0x285   :  { %v431_v33 = vsub.f32 %v427_v28, %v430_v32  ;;  %v311_v41 = vsub.f32 %v307_v29, %v310_v40 }
 0x287   :  { %v432_v34 = vmul.f32 1.442695, %v431_v33  ;;  %v312_v42 = vmul.f32 1.442695, %v311_v41 }
 0x289   :  { %1411 = vpow2.f32 %v432_v34 }
 0x28a   :  { %1413 = vpow2.f32 %v312_v42 }
 0x28c   :  { %v78_v60 = vpop.xlane.xlu1 %77 }
 0x28d   :  { %vm79_vm5 = vcmp.ne.f32.partialorder %v78_v60, 0.0 }
 0x28e   :  { %v80_v61 = vsel %vm79_vm5, %v78_v60, 1.0 }
 0x28f   :  { %v1412_v36 = vpop.eup %1411 }
 0x290   :  { %v434_v37 = vmul.f32 %v1412_v36, %v1605_v21  ;;  %v1414_v43 = vpop.eup %1413  ;;  %v1407_v36 = vld [vmem:[%s1819_s13] ss:$0 sm:$0xff] }
 0x291   :  { %v314_v44 = vmul.f32 %v1414_v43, %v1605_v21 }
 0x292   :  { %v435_v38 = vsel %vm75_vm3, %v434_v37, 0.0 }
 0x293   :  { %436 = vadd.xlane.f32.xlu2 %v435_v38  ;;  %v315_v45 = vsel %vm75_vm3, %v314_v44, 0.0 }
 0x2a1   :  { %1390 = vset.pattern.permute.xlu0 %v1442_v12 }
 0x2ab   :  { %1386 = vrot.lane.b32.xlu2 %v1385_v39, %s1443_s2 }
 0x2d4   :  { %316 = vadd.xlane.f32.xlu2 %v315_v45 }
 0x2de   :  { %v99_v46 = vpop.trf.xlu0 }
 0x2df   :  { %1328 = vmatmul.msk.f32.vlgmr.msra.gmra.mxu0 %vm115_vm2, %v99_v46 }
 0x2e0   :  { %575 = vmatpush.msra.mxu0 %v555_v55 }
 0x2e6   :  { %v100_v54 = vpop.trf.xlu0 }
 0x2e7   :  { %1329 = vmatmul.msk.f32.gmra.mxu0 %vm115_vm2, %v100_v54 }
 0x306   :  { %v437_v47 = vpop.xlane.xlu2 %436 }
 0x307   :  { %v438_v48 = vadd.f32 1e-16, %v437_v47  ;;  %v636_v47 = vld [vmem:[%s1821_s15] sm:$0x3] }
 0x309   :  { %1415 = vrcp.f32 %v438_v48 }
 0x30e   :  { %v1387_v49 = vpop.permute.xlu2 %1386 }
 0x30f   :  { %v1416_v50 = vpop.eup %1415  ;;  %v1388_v51 = vunpack.i.l.bf16 %v1387_v49  ;;  %v1389_v53 = vunpack.i.h.bf16 %v1387_v49 }
 0x310   :  { %v440_v52 = vmul.f32 %v1416_v50, %v434_v37 }
 0x311   :  { %464 = vmatpush.msrb.mxu2 %v1388_v51 }
 0x312   :  { %471 = vxpose.xlu1.b32.start.end [1/1] (short) (narrow) %v440_v52, 16 }
 0x313   :  { %465 = vmatpush.msrb.mxu2 %v1389_v53 }
 0x314   :  { %1343 = vmatmul.msk.f32.vlgmr.msrb.gmra.mxu2 %vm75_vm3, %v440_v52 }
 0x315   :  { %604 = vmatpush.msra.mxu2 %v583_v9 }
 0x317   :  { %605 = vmatpush.msra.mxu2 %v582_v10 }
 0x347   :  { %v317_v56 = vpop.xlane.xlu2 %316 }
 0x348   :  { %v318_v57 = vadd.f32 1e-16, %v317_v56 }
 0x34a   :  { %1417 = vrcp.f32 %v318_v57 }
 0x34b   :  { %1419 = vrcp.f32 %v80_v61 }
 0x350   :  { %v1418_v58 = vpop.eup %1417 }
 0x351   :  { %v320_v59 = vmul.f32 %v1418_v58, %v314_v44  ;;  %v1420_v0 = vpop.eup %1419 }
 0x352   :  { %v1633_v1 = vsel %vm79_vm5, %v1420_v0, 0.0 }
 0x353   :  { %345 = vxpose.xlu2.b32.start.end [1/1] (short) (narrow) %v320_v59, 16  ;;  %1340 = vmatmul.msk.f32.vlgmr.msrb.gmra.mxu0 %vm75_vm3, %v320_v59 }
 0x354   :  { %630 = vmatpush.msrb.mxu0 %v583_v9 }
 0x356   :  { %631 = vmatpush.msrb.mxu0 %v582_v10 }
 0x35b   :  { %1346 = vmatmul.msk.f32.vlgmr.msra.gmra.mxu0 %vm115_vm2, %v1586_v8 }
 0x35c   :  { %v139_v62 = vpop.f32.mrf.mxu0 }
 0x35d   :  { %vm145_vm6 = vcmp.ne.f32.partialorder %v139_v62, 0.0 }
 0x35e   :  { %v147_v63 = vsel %vm145_vm6, %v139_v62, 1.0 }
 0x35f   :  { %1421 = vrcp.f32 %v147_v63 }
 0x364   :  { %v142_v6 = vpop.f32.mrf.mxu0 }
 0x365   :  { %1392 = vset.pattern.permute.xlu1 %v1441_v11  ;;  %v1422_v4 = vpop.eup %1421  ;;  %vm146_vm7 = vcmp.ne.f32.partialorder %v142_v6, 0.0 }
 0x366   :  { %v151_v5 = vsel %vm145_vm6, %v1422_v4, 0.0  ;;  %v148_v7 = vsel %vm146_vm7, %v142_v6, 1.0 }
 0x367   :  { %408 = vperm.xlu0 %1390, %v151_v5   ;;  %1423 = vrcp.f32 %v148_v7 }
 0x36f   :  { %1399 = vset.pattern.permute.xlu0 %v1441_v11  ;;  %v1424_v11 = vpop.eup %1423 }
 0x370   :  { %v152_v14 = vsel %vm146_vm7, %v1424_v11, 0.0 }
 0x397   :  { %v467_v2 = vpop.f32.mrf.mxu2 }
 0x398   :  { %v470_v3 = vmul.f32 %v467_v2, %v1633_v1 }
 0x39a   :  { %524 = vmatpush.msra.mxu3 %v470_v3 }
 0x39c   :  { %1353 = vmatpush.xpose.msk.msrb.mxu3 %vm75_vm3, %v666_v23 }
 0x3b5   :  { %1391 = vset.pattern.permute.xlu2 %v1442_v12 }
 0x3b6   :  { %v487_v8 = vpop.trf.xlu1 }
 0x3b7   :  { %1344 = vmatmul.msk.f32.vlgmr.msra.gmra.mxu3 %vm115_vm2, %v487_v8 }
 0x3be   :  { %v488_v13 = vpop.trf.xlu1 }
 0x3bf   :  { %1345 = vmatmul.msk.f32.gmra.mxu3 %vm115_vm2, %v488_v13 }
 0x3c4   :  { %413 = vperm.xlu2 %1391, %v152_v14   ;;  %v939_v14 = vld [vmem:[%s1822_s8 + $0x8] sm:$0xff] }
 0x3d0   :  { %v341_v15 = vpop.f32.mrf.mxu0 }
 0x3d1   :  { %v344_v16 = vmul.f32 %v341_v15, %v1633_v1  ;;  %v938_v15 = vld [vmem:[%s1822_s8] sm:$0xff] }
 0x3d3   :  { %398 = vmatpush.msra.mxu1 %v344_v16 }
 0x3d8   :  { %v577_v18 = vpop.f32.mrf.mxu0 }
 0x3d9   :  { %v1652_v19 = vadd.f32 %v1406_v17, %v577_v18  ;;  %v1662_v24 = vpop.permute.xlu0 %408 }
 0x3db   :  { %1349 = vmatmul.msk.f32.vlgmr.msrb.gmra.mxu0 %vm75_vm3, %v1652_v19 }
 0x3ec   :  { %v361_v20 = vpop.trf.xlu2 }
 0x3ed   :  { %1341 = vmatmul.msk.f32.vlgmr.msra.gmra.mxu1 %vm115_vm2, %v361_v20 }
 0x3f4   :  { %v362_v22 = vpop.trf.xlu2 }
 0x3f5   :  { %1342 = vmatmul.msk.f32.gmra.mxu1 %vm115_vm2, %v362_v22 }
 0x41e   :  { %v1666_v27 = vpop.permute.xlu2 %413 }
 0x43a   :  { %v526_v25 = vpop.f32.mrf.mxu3 }
 0x43b   :  { %v532_v26 = vmul.f32 %v526_v25, %v1662_v24 }
 0x43d   :  { %536 = vrot.lane.b32.xlu1 %v532_v26, %s1444_s7 }
 0x442   :  { %v529_v28 = vpop.f32.mrf.mxu3 }
 0x443   :  { %v533_v29 = vmul.f32 %v529_v28, %v1666_v27  ;;  %v967_v28 = vld [vmem:[%s1824_s18 + $0x8] sm:$0xff] }
 0x445   :  { %538 = vrot.lane.b32.xlu0 %v533_v29, %s1444_s7  ;;  %v966_v29 = vld [vmem:[%s1824_s18] sm:$0xff] }
 0x458   :  { %v633_v30 = vpop.f32.mrf.mxu0 }
 0x459   :  { %1354 = vmatmul.msk.f32.vlgmr.msrb.gmra.mxu3 %vm75_vm3, %v633_v30 }
 0x46a   :  { %v400_v31 = vpop.f32.mrf.mxu1 }
 0x46b   :  { %v416_v32 = vmul.f32 %v1662_v24, %v400_v31 }
 0x46d   :  { %418 = vst.msk [vmem:[#allocation2] sm:$0xff] %vm115_vm2, %v416_v32 }
 0x472   :  { %v403_v33 = vpop.f32.mrf.mxu1 }
 0x473   :  { %v417_v34 = vmul.f32 %v1666_v27, %v403_v33 }
 0x475   :  { %419 = vst.msk [vmem:[#allocation2 + $0x8] sm:$0xff] %vm115_vm2, %v417_v34 }
 0x4af   :  { %v537_v35 = vpop.permute.xlu1 %536 }
 0x4b0   :  { %543 = vst.msk [vmem:[#allocation2] sm:$0xff] %vm542_vm8, %v537_v35 }
 0x4b7   :  { %v545_v37 = vld [vmem:[#allocation2] sm:$0xff]  ;;  %v539_v38 = vpop.permute.xlu0 %538 }
 0x4b8   :  { %v551_v39 = vadd.f32 %v1407_v36, %v545_v37  ;;  %544 = vst.msk [vmem:[#allocation2 + $0x8] sm:$0xff] %vm542_vm8, %v539_v38 }
 0x4ba   :  { %553 = vst.msk [vmem:[#allocation2] sm:$0xff] %vm75_vm3, %v551_v39 }
 0x4bf   :  { %v546_v40 = vld [vmem:[#allocation2 + $0x8] sm:$0xff] }
 0x4c0   :  { %v552_v41 = vadd.f32 %v1407_v36, %v546_v40  ;;  %v1050_v36 = vld [vmem:[%s1825_s20] sm:$0x3] }
 0x4c1   :  { %v580_v42 = vld [vmem:[#allocation2] sm:$0xff] }
 0x4c2   :  { %554 = vst.msk [vmem:[#allocation2 + $0x8] sm:$0xff] %vm75_vm3, %v552_v41  ;;  %1347 = vmatmul.msk.f32.vlgmr.msra.gmra.mxu2 %vm75_vm3, %v580_v42 }
 0x4c9   :  { %v581_v43 = vld [vmem:[#allocation2 + $0x8] sm:$0xff] }
 0x4ca   :  { %1348 = vmatmul.msk.f32.gmra.mxu2 %vm75_vm3, %v581_v43 }
 0x4dc   :  { %v690_v44 = vpop.f32.mrf.mxu3 }
 0x4dd   :  { %805 = vperm.xlu1 %1392, %v690_v44  }
 0x4e5   :  { %1393 = vset.pattern.permute.xlu1 %v1442_v12 }
 0x4e6   :  { %695 = vperm.xlu1 %1393, %v690_v44  }
 0x545   :  { %v607_v45 = vpop.f32.mrf.mxu2 }
 0x54d   :  { %v610_v46 = vpop.f32.mrf.mxu2 }
 0x54e   :  { %1350 = vmatpush.xpose.msk.msrb.mxu1 %vm75_vm3, %v610_v46  ;;  %732 = vmatpush.msra.mxu0 %v610_v46  ;;  %v1394_v60 = vpack.i.bf16 %v607_v45, %v610_v46 }
 0x54f   :  { %v806_v48 = vpop.permute.xlu1 %805 }
 0x550   :  { %733 = vmatpush.msra.mxu0 %v607_v45 }
 0x552   :  { %1351 = vmatpush.xpose.msk.msrb.mxu1 %vm75_vm3, %v607_v45  ;;  %958 = vmatpush.msrb.mxu0 %v939_v14 }
 0x554   :  { %959 = vmatpush.msrb.mxu0 %v938_v15 }
 0x555   :  { %1352 = vmatmul.msk.f32.vlgmr.msrb.gmra.mxu1 %vm75_vm3, %v636_v47 }
 0x558   :  { %v696_v12 = vpop.permute.xlu1 %695 }
 0x5d2   :  { %v663_v49 = vpop.f32.mrf.mxu1 }
 0x5d3   :  { %v698_v50 = vperm.slane %v663_v49, 0  ;;  %v808_v51 = vperm.slane %v663_v49, 1 }
 0x5d5   :  { %v699_v52 = vadd.f32 %v698_v50, %v696_v12  ;;  %v809_v53 = vadd.f32 %v808_v51, %v806_v48  ;;  %v1409_v12 = vld [vmem:[%s1826_s17] ss:$0 sm:$0xff] }
 0x5d7   :  { %v810_v54 = vmax.f32 %v809_v53, 0.0  ;;  %v700_v55 = vmax.f32 %v699_v52, 0.0 }
 0x5d9   :  { %v811_v56 = vsel %vm73_vm4, %v810_v54, -1e+30  ;;  %v701_v57 = vsel %vm73_vm4, %v700_v55, -1e+30 }
 0x5da   :  { %v812_v58 = vsel %vm75_vm3, %v811_v56, -inf  ;;  %v702_v59 = vsel %vm75_vm3, %v701_v57, -inf }
 0x5db   :  { %813 = vmax.xlane.f32.xlu0 %v812_v58  ;;  %703 = vmax.xlane.f32.xlu2 %v702_v59 }
 0x5ef   :  { %1395 = vrot.lane.b32.xlu0 %v1394_v60, %s1443_s2 }
 0x64e   :  { %v814_v61 = vpop.xlane.xlu0 %813  ;;  %v704_v62 = vpop.xlane.xlu2 %703 }
 0x64f   :  { %v815_v63 = vsub.f32 %v811_v56, %v814_v61  ;;  %v705_v0 = vsub.f32 %v701_v57, %v704_v62  ;;  %v1020_v61 = vld [vmem:[%s1827_s19] sm:$0x3]  ;;  %s1445_s19 = smov 124  }
 0x651   :  { %v816_v2 = vmul.f32 1.442695, %v815_v63  ;;  %v706_v3 = vmul.f32 1.442695, %v705_v0 }
 0x653   :  { %1425 = vpow2.f32 %v816_v2 }
 0x654   :  { %1427 = vpow2.f32 %v706_v3 }
 0x659   :  { %v1426_v4 = vpop.eup %1425 }
 0x65a   :  { %v1428_v5 = vpop.eup %1427  ;;  %v818_v6 = vmul.f32 %v1426_v4, %v1605_v21 }
 0x65b   :  { %v708_v7 = vmul.f32 %v1428_v5, %v1605_v21 }
 0x65c   :  { %v819_v8 = vsel %vm75_vm3, %v818_v6, 0.0 }
 0x65d   :  { %820 = vadd.xlane.f32.xlu1 %v819_v8  ;;  %v709_v9 = vsel %vm75_vm3, %v708_v7, 0.0 }
 0x65e   :  { %710 = vadd.xlane.f32.xlu2 %v709_v9 }
 0x661   :  { %v1396_v10 = vpop.permute.xlu0 %1395 }
 0x662   :  { %v1397_v11 = vunpack.i.l.bf16 %v1396_v10  ;;  %v1398_v13 = vunpack.i.h.bf16 %v1396_v10 }
 0x664   :  { %848 = vmatpush.msrb.mxu2 %v1397_v11 }
 0x666   :  { %849 = vmatpush.msrb.mxu2 %v1398_v13 }
 0x668   :  { %988 = vmatpush.msra.mxu2 %v967_v28 }
 0x66a   :  { %989 = vmatpush.msra.mxu2 %v966_v29 }
 0x6d0   :  { %v821_v16 = vpop.xlane.xlu1 %820 }
 0x6d1   :  { %v711_v17 = vpop.xlane.xlu2 %710  ;;  %v822_v18 = vadd.f32 1e-16, %v821_v16 }
 0x6d2   :  { %v712_v20 = vadd.f32 1e-16, %v711_v17 }
 0x6d3   :  { %1429 = vrcp.f32 %v822_v18 }
 0x6d4   :  { %1431 = vrcp.f32 %v712_v20 }
 0x6d9   :  { %v1430_v22 = vpop.eup %1429 }
 0x6da   :  { %v1432_v23 = vpop.eup %1431  ;;  %v824_v25 = vmul.f32 %v1430_v22, %v818_v6 }
 0x6db   :  { %v714_v26 = vmul.f32 %v1432_v23, %v708_v7 }
 0x6dc   :  { %855 = vxpose.xlu1.b32.start.end [1/1] (short) (narrow) %v824_v25, 16  ;;  %1358 = vmatmul.msk.f32.vlgmr.msrb.gmra.mxu2 %vm75_vm3, %v824_v25 }
 0x6dd   :  { %739 = vxpose.xlu2.b32.start.end [1/1] (short) (narrow) %v714_v26, 16  ;;  %1355 = vmatmul.msk.f32.vlgmr.msra.gmra.mxu0 %vm75_vm3, %v714_v26 }
 0x6de   :  { %1014 = vmatpush.msra.mxu0 %v967_v28 }
 0x6e0   :  { %1015 = vmatpush.msra.mxu0 %v966_v29 }
 0x6e5   :  { %1361 = vmatmul.msk.f32.vlgmr.msrb.gmra.mxu0 %vm75_vm3, %v1652_v19  ;;  %v1408_v19 = vld [vmem:[%s1823_s9] ss:$0 sm:$0xff] }
 0x75a   :  { %v735_v30 = vpop.f32.mrf.mxu0 }
 0x75b   :  { %v738_v31 = vmul.f32 %v735_v30, %v1633_v1 }
 0x75d   :  { %792 = vmatpush.msra.mxu1 %v738_v31 }
 0x75f   :  { %v851_v32 = vpop.f32.mrf.mxu2 }
 0x760   :  { %v854_v33 = vmul.f32 %v851_v32, %v1633_v1 }
 0x762   :  { %v961_v34 = vpop.f32.mrf.mxu0  ;;  %908 = vmatpush.msra.mxu3 %v854_v33 }
 0x763   :  { %v962_v35 = vadd.f32 %v1408_v19, %v961_v34 }
 0x764   :  { %1368 = vmatpush.xpose.msk.msrb.mxu3 %vm115_vm2, %v1050_v36 }
 0x765   :  { %1364 = vmatmul.msk.f32.vlgmr.msra.gmra.mxu0 %vm75_vm3, %v962_v35 }
 0x776   :  { %v755_v37 = vpop.trf.xlu2 }
 0x777   :  { %1356 = vmatmul.msk.f32.vlgmr.msra.gmra.mxu1 %vm115_vm2, %v755_v37 }
 0x77e   :  { %v756_v38 = vpop.trf.xlu2 }
 0x77f   :  { %1357 = vmatmul.msk.f32.gmra.mxu1 %vm115_vm2, %v756_v38 }
 0x780   :  { %v871_v39 = vpop.trf.xlu1 }
 0x781   :  { %1359 = vmatmul.msk.f32.vlgmr.msra.gmra.mxu3 %vm115_vm2, %v871_v39 }
 0x788   :  { %v872_v40 = vpop.trf.xlu1 }
 0x789   :  { %1360 = vmatmul.msk.f32.gmra.mxu3 %vm115_vm2, %v872_v40 }
 0x7e2   :  { %v1017_v41 = vpop.f32.mrf.mxu0 }
 0x7e3   :  { %1369 = vmatmul.msk.f32.vlgmr.msrb.gmra.mxu3 %vm115_vm2, %v1017_v41 }
 0x7f4   :  { %v794_v42 = vpop.f32.mrf.mxu1 }
 0x7f5   :  { %v800_v43 = vmul.f32 %v794_v42, %v1662_v24 }
 0x7f7   :  { %802 = vst.msk [vmem:[#allocation3] sm:$0xff] %vm115_vm2, %v800_v43 }
 0x7fc   :  { %v797_v44 = vpop.f32.mrf.mxu1 }
 0x7fd   :  { %v801_v45 = vmul.f32 %v797_v44, %v1666_v27 }
 0x7ff   :  { %803 = vst.msk [vmem:[#allocation3 + $0x8] sm:$0xff] %vm115_vm2, %v801_v45 }
 0x804   :  { %v910_v46 = vpop.f32.mrf.mxu3 }
 0x805   :  { %v916_v47 = vmul.f32 %v910_v46, %v1662_v24 }
 0x807   :  { %920 = vrot.lane.b32.xlu0 %v916_v47, %s1444_s7 }
 0x80c   :  { %v913_v48 = vpop.f32.mrf.mxu3 }
 0x80d   :  { %v917_v49 = vmul.f32 %v913_v48, %v1666_v27 }
 0x80f   :  { %922 = vrot.lane.b32.xlu0 %v917_v49, %s1444_s7 }
 0x866   :  { %v1074_v50 = vpop.f32.mrf.mxu3 }
 0x867   :  { %1079 = vperm.xlu2 %1391, %v1074_v50   ;;  %1190 = vperm.xlu0 %1399, %v1074_v50  }
 0x879   :  { %v921_v51 = vpop.permute.xlu0 %920 }
 0x87a   :  { %926 = vst.msk [vmem:[#allocation3] sm:$0xff] %vm542_vm8, %v921_v51 }
 0x881   :  { %v928_v52 = vld [vmem:[#allocation3] sm:$0xff]  ;;  %v923_v53 = vpop.permute.xlu0 %922 }
 0x882   :  { %v934_v54 = vadd.f32 %v1409_v12, %v928_v52  ;;  %927 = vst.msk [vmem:[#allocation3 + $0x8] sm:$0xff] %vm542_vm8, %v923_v53 }
 0x884   :  { %936 = vst.msk [vmem:[#allocation3] sm:$0xff] %vm75_vm3, %v934_v54 }
 0x889   :  { %v929_v55 = vld [vmem:[#allocation3 + $0x8] sm:$0xff] }
 0x88a   :  { %v935_v56 = vadd.f32 %v1409_v12, %v929_v55 }
 0x88b   :  { %v964_v57 = vld [vmem:[#allocation3] sm:$0xff] }
 0x88c   :  { %937 = vst.msk [vmem:[#allocation3 + $0x8] sm:$0xff] %vm75_vm3, %v935_v56  ;;  %1362 = vmatmul.msk.f32.vlgmr.msra.gmra.mxu2 %vm75_vm3, %v964_v57 }
 0x893   :  { %v965_v58 = vld [vmem:[#allocation3 + $0x8] sm:$0xff] }
 0x894   :  { %1363 = vmatmul.msk.f32.gmra.mxu2 %vm75_vm3, %v965_v58 }
 0x8c1   :  { %v1080_v2 = vpop.permute.xlu2 %1079 }
 0x8d9   :  { %v1191_v3 = vpop.permute.xlu0 %1190 }
 0x90f   :  { %v991_v59 = vpop.f32.mrf.mxu2 }
 0x917   :  { %v994_v60 = vpop.f32.mrf.mxu2 }
 0x918   :  { %1365 = vmatpush.xpose.msk.msrb.mxu1 %vm115_vm2, %v994_v60  ;;  %1116 = vmatpush.msrb.mxu0 %v994_v60  ;;  %v1400_v20 = vpack.i.bf16 %v991_v59, %v994_v60 }
 0x91a   :  { %1117 = vmatpush.msrb.mxu0 %v991_v59 }
 0x91c   :  { %1366 = vmatpush.xpose.msk.msrb.mxu1 %vm115_vm2, %v991_v59 }
 0x91f   :  { %1367 = vmatmul.msk.f32.vlgmr.msrb.gmra.mxu1 %vm115_vm2, %v1020_v61 }
 0x99c   :  { %v1047_v62 = vpop.f32.mrf.mxu1 }
 0x99d   :  { %v1082_v63 = vperm.slane %v1047_v62, 0  ;;  %v1193_v0 = vperm.slane %v1047_v62, 1 }
 0x99f   :  { %v1083_v4 = vadd.f32 %v1082_v63, %v1080_v2  ;;  %v1194_v5 = vadd.f32 %v1193_v0, %v1191_v3 }
 0x9a1   :  { %v1084_v6 = vmax.f32 %v1083_v4, 0.0  ;;  %v1195_v7 = vmax.f32 %v1194_v5, 0.0 }
 0x9a3   :  { %v1085_v8 = vsel %vm73_vm4, %v1084_v6, -1e+30  ;;  %v1196_v9 = vsel %vm73_vm4, %v1195_v7, -1e+30 }
 0x9a4   :  { %v1086_v10 = vsel %vm75_vm3, %v1085_v8, -inf  ;;  %v1197_v11 = vsel %vm75_vm3, %v1196_v9, -inf }
 0x9a5   :  { %1087 = vmax.xlane.f32.xlu1 %v1086_v10  ;;  %1198 = vmax.xlane.f32.xlu0 %v1197_v11 }
 0xa18   :  { %v1199_v13 = vpop.xlane.xlu0 %1198  ;;  %v1088_v22 = vpop.xlane.xlu1 %1087 }
 0xa19   :  { %v1200_v14 = vsub.f32 %v1196_v9, %v1199_v13  ;;  %v1089_v23 = vsub.f32 %v1085_v8, %v1088_v22 }
 0xa1b   :  { %v1201_v15 = vmul.f32 1.442695, %v1200_v14  ;;  %v1090_v25 = vmul.f32 1.442695, %v1089_v23 }
 0xa1d   :  { %1433 = vpow2.f32 %v1201_v15 }
 0xa1e   :  { %1435 = vpow2.f32 %v1090_v25 }
 0xa23   :  { %v1434_v16 = vpop.eup %1433 }
 0xa24   :  { %v1203_v17 = vmul.f32 %v1434_v16, %v1605_v21  ;;  %v1436_v26 = vpop.eup %1435 }
 0xa25   :  { %v1092_v28 = vmul.f32 %v1436_v26, %v1605_v21 }
 0xa26   :  { %v1204_v18 = vsel %vm75_vm3, %v1203_v17, 0.0 }
 0xa27   :  { %1205 = vadd.xlane.f32.xlu0 %v1204_v18  ;;  %v1093_v29 = vsel %vm75_vm3, %v1092_v28, 0.0 }
 0xa3b   :  { %1401 = vrot.lane.b32.xlu0 %v1400_v20, %s1445_s19 }
 0xa65   :  { %1094 = vadd.xlane.f32.xlu0 %v1093_v29 }
 0xa9a   :  { %v1206_v30 = vpop.xlane.xlu0 %1205 }
 0xa9b   :  { %v1207_v31 = vadd.f32 1e-16, %v1206_v30 }
 0xa9d   :  { %1437 = vrcp.f32 %v1207_v31 }
 0xaa3   :  { %v1438_v32 = vpop.eup %1437 }
 0xaa4   :  { %v1209_v19 = vmul.f32 %v1438_v32, %v1203_v17 }
 0xaa6   :  { %1240 = vxpose.xlu0.b32.start.end [1/1] (short) (narrow) %v1209_v19, 16 }
 0xaad   :  { %v1402_v33 = vpop.permute.xlu0 %1401 }
 0xaae   :  { %v1403_v34 = vunpack.i.l.bf16 %v1402_v33  ;;  %v1404_v35 = vunpack.i.h.bf16 %v1402_v33 }
 0xab0   :  { %1233 = vmatpush.msrb.mxu2 %v1403_v34 }
 0xab2   :  { %1234 = vmatpush.msrb.mxu2 %v1404_v35 }
 0xab3   :  { %1373 = vmatmul.msk.f32.vlgmr.msrb.gmra.mxu2 %vm75_vm3, %v1209_v19 }
 0xad8   :  { %v1095_v36 = vpop.xlane.xlu0 %1094 }
 0xad9   :  { %v1096_v37 = vadd.f32 1e-16, %v1095_v36 }
 0xadb   :  { %1439 = vrcp.f32 %v1096_v37 }
 0xae1   :  { %v1440_v21 = vpop.eup %1439 }
 0xae2   :  { %v1098_v38 = vmul.f32 %v1440_v21, %v1092_v28 }
 0xae4   :  { %1123 = vxpose.xlu2.b32.start.end [1/1] (short) (narrow) %v1098_v38, 16  ;;  %1370 = vmatmul.msk.f32.vlgmr.msrb.gmra.mxu0 %vm75_vm3, %v1098_v38 }
 0xb36   :  { %v1236_v39 = vpop.f32.mrf.mxu2 }
 0xb37   :  { %v1239_v40 = vmul.f32 %v1236_v39, %v1633_v1 }
 0xb39   :  { %1293 = vmatpush.msra.mxu3 %v1239_v40 }
 0xb4a   :  { %v1256_v41 = vpop.trf.xlu0 }
 0xb4b   :  { %1374 = vmatmul.msk.f32.vlgmr.msra.gmra.mxu3 %vm115_vm2, %v1256_v41 }
 0xb52   :  { %v1257_v42 = vpop.trf.xlu0 }
 0xb53   :  { %1375 = vmatmul.msk.f32.gmra.mxu3 %vm115_vm2, %v1257_v42 }
 0xb61   :  { %v1119_v43 = vpop.f32.mrf.mxu0 }
 0xb62   :  { %v1122_v44 = vmul.f32 %v1119_v43, %v1633_v1 }
 0xb64   :  { %1176 = vmatpush.msra.mxu1 %v1122_v44 }
 0xb7d   :  { %v1139_v45 = vpop.trf.xlu2 }
 0xb7e   :  { %1371 = vmatmul.msk.f32.vlgmr.msra.gmra.mxu1 %vm115_vm2, %v1139_v45 }
 0xb85   :  { %v1140_v46 = vpop.trf.xlu2 }
 0xb86   :  { %1372 = vmatmul.msk.f32.gmra.mxu1 %vm115_vm2, %v1140_v46 }
 0xbce   :  { %v1295_v47 = vpop.f32.mrf.mxu3 }
 0xbcf   :  { %v1301_v48 = vmul.f32 %v1295_v47, %v1662_v24 }
 0xbd1   :  { %1305 = vrot.lane.b32.xlu1 %v1301_v48, %s1446_s5 }
 0xbd6   :  { %v1298_v49 = vpop.f32.mrf.mxu3 }
 0xbd7   :  { %v1302_v50 = vmul.f32 %v1298_v49, %v1666_v27 }
 0xbd9   :  { %1307 = vrot.lane.b32.xlu1 %v1302_v50, %s1446_s5 }
 0xbfb   :  { %v1178_v51 = vpop.f32.mrf.mxu1 }
 0xbfc   :  { %v1184_v1 = vmul.f32 %v1178_v51, %v1662_v24  ;;  %v1410_v24 = vld [vmem:[%s1828_s21] ss:$0 sm:$0xff] }
 0xbfe   :  { %1187 = vst.msk [vmem:[%s1829_s22] sm:$0xff] %vm1186_vm9, %v1184_v1 }
 0xc03   :  { %v1181_v12 = vpop.f32.mrf.mxu1 }
 0xc04   :  { %v1185_v52 = vmul.f32 %v1181_v12, %v1666_v27 }
 0xc06   :  { %1188 = vst.msk [vmem:[%s1829_s22 + $0x8] sm:$0xff] %vm1186_vm9, %v1185_v52 }
 0xc43   :  { %v1306_v53 = vpop.permute.xlu1 %1305 }
 0xc44   :  { %1312 = vst.msk [vmem:[%s1829_s22] sm:$0xff] %vm1311_vm10, %v1306_v53 }
 0xc4b   :  { %v1314_v54 = vld [vmem:[%s1829_s22] sm:$0xff]  ;;  %v1308_v55 = vpop.permute.xlu1 %1307 }
 0xc4c   :  { %v1320_v27 = vadd.f32 %v1410_v24, %v1314_v54  ;;  %1313 = vst.msk [vmem:[%s1829_s22 + $0x8] sm:$0xff] %vm1311_vm10, %v1308_v55 }
 0xc4e   :  { %1322 = vst.msk [vmem:[%s1829_s22] sm:$0xff] %vm115_vm2, %v1320_v27 }
 0xc53   :  { %v1315_v56 = vld [vmem:[%s1829_s22 + $0x8] sm:$0xff] }
 0xc54   :  { %v1321_v57 = vadd.f32 %v1410_v24, %v1315_v56 }
 0xc56   :  { %1323 = vst.msk [vmem:[%s1829_s22 + $0x8] sm:$0xff] %vm115_vm2, %v1321_v57 }

</bundles_post_ra>
